<compile_context>
chip_gen: v7x
topology: tpu7x:2x2x1
jax: 0.10.0
libtpu: 0.0.40
codegen_flags: <defaults>
</compile_context>

<pallas_src>
import math
import jax
import jax.numpy as jnp
from jax.experimental import pallas as pl
from jax.experimental.pallas import tpu as pltpu


# ---------------------------------------------------------------------------
# Kernel
# ---------------------------------------------------------------------------
def _mlp_kernel(x_ref,
                w1_ref, b1_ref,
                w2_ref, b2_ref,
                w3_ref, b3_ref,
                w4_ref, b4_ref,
                o_ref):
    cdt = w1_ref.dtype  # compute dtype of the MXU operands (bf16 or f32)

    h = x_ref[...]
    # fc1 + relu
    h = jnp.dot(h, w1_ref[...], preferred_element_type=jnp.float32) + b1_ref[...]
    h = jnp.maximum(h, 0.0).astype(cdt)
    # fc2 + relu
    h = jnp.dot(h, w2_ref[...], preferred_element_type=jnp.float32) + b2_ref[...]
    h = jnp.maximum(h, 0.0).astype(cdt)
    # fc3 + relu
    h = jnp.dot(h, w3_ref[...], preferred_element_type=jnp.float32) + b3_ref[...]
    h = jnp.maximum(h, 0.0).astype(cdt)
    # fc4 (no relu)
    h = jnp.dot(h, w4_ref[...], preferred_element_type=jnp.float32) + b4_ref[...]
    o_ref[...] = h.astype(o_ref.dtype)


# ---------------------------------------------------------------------------
# Wrapper
# ---------------------------------------------------------------------------
def _round_up(n, m):
    return ((n + m - 1) // m) * m


def _pad2d(a, rows, cols):
    r, c = a.shape
    return jnp.pad(a, ((0, rows - r), (0, cols - c)))


def fc_original_encode(x, params, *, batch_tile=256, compute_dtype=jnp.bfloat16):
    """Fused 4-layer MLP forward.

    x:      (B, x_dim) float32
    params: dict with PyTorch-layout weights wN (out, in) f32 and biases bN (out,) f32
    Returns (B, h_dim4) float32.
    """
    B, x_dim = x.shape
    ws = [params["w1"], params["w2"], params["w3"], params["w4"]]
    bs = [params["b1"], params["b2"], params["b3"], params["b4"]]
    dims = [x_dim] + [w.shape[0] for w in ws]          # [in, h1, h2, h3, h4]
    out_dim = dims[-1]

    # --- lane / batch padding -------------------------------------------------
    pdims = [_round_up(d, 128) for d in dims]          # 128-lane aligned dims
    Bp = _round_up(B, batch_tile)

    x_p = _pad2d(x, Bp, pdims[0]).astype(compute_dtype)

    w_p, b_p = [], []
    for li, (w, b) in enumerate(zip(ws, bs)):
        # PyTorch (out, in) -> kernel (in, out), zero-pad both dims to 128 multiples.
        wt = _pad2d(w.T, pdims[li], pdims[li + 1]).astype(compute_dtype)
        bb = _pad2d(b.reshape(1, -1), 1, pdims[li + 1]).astype(jnp.float32)
        w_p.append(wt)
        b_p.append(bb)

    grid = (Bp // batch_tile,)

    x_map = lambda i: (i, 0)
    rep_map = lambda i: (0, 0)                         # weights/biases: constant block
    full = lambda a: pl.BlockSpec(a.shape, rep_map)

    # --- cost estimate ----------------------------------------------------------
    flops = 2 * Bp * sum(pdims[i] * pdims[i + 1] for i in range(4))
    bytes_accessed = (
        x_p.size * x_p.dtype.itemsize
        + sum(int(w.size) * w.dtype.itemsize for w in w_p)
        + sum(int(b.size) * b.dtype.itemsize for b in b_p)
        + Bp * pdims[-1] * 4
    )
    cost = pl.CostEstimate(flops=flops, transcendentals=0,
                           bytes_accessed=bytes_accessed)

    out_p = pl.pallas_call(
        _mlp_kernel,
        out_shape=jax.ShapeDtypeStruct((Bp, pdims[-1]), jnp.float32),
        grid_spec=pltpu.PrefetchScalarGridSpec(
            num_scalar_prefetch=0,
            grid=grid,
            in_specs=[
                pl.BlockSpec((batch_tile, pdims[0]), x_map),
                full(w_p[0]), full(b_p[0]),
                full(w_p[1]), full(b_p[1]),
                full(w_p[2]), full(b_p[2]),
                full(w_p[3]), full(b_p[3]),
            ],
            out_specs=pl.BlockSpec((batch_tile, pdims[-1]), x_map),
        ),
        compiler_params=pltpu.CompilerParams(
            dimension_semantics=("parallel",),
            vmem_limit_bytes=32 * 1024 * 1024,
        ),
        cost_estimate=cost,
    )(x_p, w_p[0], b_p[0], w_p[1], b_p[1], w_p[2], b_p[2], w_p[3], b_p[3])

    return out_p[:B, :out_dim]


# ---------------------------------------------------------------------------
# Parameter init matching nn.Linear.reset_parameters()
# (kaiming_uniform_(a=sqrt(5)) on (out, in) weight => U(-1/sqrt(in), 1/sqrt(in)))
# ---------------------------------------------------------------------------
def init_linear_params(key, in_features, out_features):
    kw, kb = jax.random.split(key)
    bound = 1.0 / math.sqrt(in_features)
    w = jax.random.uniform(kw, (out_features, in_features),
                           dtype=jnp.float32, minval=-bound, maxval=bound)
    b = jax.random.uniform(kb, (out_features,),
                           dtype=jnp.float32, minval=-bound, maxval=bound)
    return w, b


def reference_mlp(x, params, compute_dtype=jnp.bfloat16):
    """Pure-JAX reference with the same bf16-operand / f32-accumulate scheme."""
    def lin(h, w, b):
        return jnp.dot(h.astype(compute_dtype), w.T.astype(compute_dtype),
                       preferred_element_type=jnp.float32) + b.astype(jnp.float32)
    h = jnp.maximum(lin(x, params["w1"], params["b1"]), 0.0)
    h = jnp.maximum(lin(h, params["w2"], params["b2"]), 0.0)
    h = jnp.maximum(lin(h, params["w3"], params["b3"]), 0.0)
    return lin(h, params["w4"], params["b4"])


# TODO(synk): receive_parameters / masked weight transfer from a previous model is
# host-side parameter plumbing (no kernel equivalent); only the forward pass is
# implemented here.

if __name__ == "__main__":
    # Module-default MLP dims: 784 -> 512 -> 256 -> 128 -> 64.
    # batch_tile=128 with B=256 gives a 2-tile grid (both v7x TensorCores busy).
    B = 256
    x_dim, h1, h2, h3, h4 = 784, 512, 256, 128, 64

    key = jax.random.PRNGKey(0)
    kx, k1, k2, k3, k4 = jax.random.split(key, 5)

    x = jax.random.normal(kx, (B, x_dim), dtype=jnp.float32)

    w1, b1 = init_linear_params(k1, x_dim, h1)
    w2, b2 = init_linear_params(k2, h1, h2)
    w3, b3 = init_linear_params(k3, h2, h3)
    w4, b4 = init_linear_params(k4, h3, h4)
    params = dict(w1=w1, b1=b1, w2=w2, b2=b2, w3=w3, b3=b3, w4=w4, b4=b4)

    out = fc_original_encode(x, params, batch_tile=128,
                             compute_dtype=jnp.bfloat16)
    out = jax.block_until_ready(out)

    ref = reference_mlp(x, params, compute_dtype=jnp.bfloat16)
    assert out.shape == (B, h4)
    assert jnp.allclose(out, ref, atol=2e-2, rtol=2e-2), (
        float(jnp.max(jnp.abs(out - ref))))

    print("KERNEL_OK")
</pallas_src>

<mosaic_0001>
module attributes {stable_mosaic.version = 11 : i64} {
  func.func @_mlp_kernel(%arg0: i32, %arg1: memref<128x896xbf16, #tpu.memory_space<vmem>>, %arg2: memref<896x512xbf16, #tpu.memory_space<vmem>>, %arg3: memref<1x512xf32, #tpu.memory_space<vmem>>, %arg4: memref<512x256xbf16, #tpu.memory_space<vmem>>, %arg5: memref<1x256xf32, #tpu.memory_space<vmem>>, %arg6: memref<256x128xbf16, #tpu.memory_space<vmem>>, %arg7: memref<1x128xf32, #tpu.memory_space<vmem>>, %arg8: memref<128x128xbf16, #tpu.memory_space<vmem>>, %arg9: memref<1x128xf32, #tpu.memory_space<vmem>>, %arg10: memref<128x128xf32, #tpu.memory_space<vmem>>) attributes {dimension_semantics = [#tpu.dimension_semantics<parallel>], iteration_bounds = array<i64: 2>, scalar_prefetch = 0 : i64, scratch_operands = 0 : i64, tpu.core_type = #tpu.core_type<tc>, window_params = [{transform_indices = @transform_0, window_bounds = array<i64: 128, 896>}, {pipeline_mode = #tpu.pipeline_mode<synchronous>, transform_indices = @transform_1, window_bounds = array<i64: 896, 512>}, {pipeline_mode = #tpu.pipeline_mode<synchronous>, transform_indices = @transform_2, window_bounds = array<i64: 1, 512>}, {pipeline_mode = #tpu.pipeline_mode<synchronous>, transform_indices = @transform_3, window_bounds = array<i64: 512, 256>}, {pipeline_mode = #tpu.pipeline_mode<synchronous>, transform_indices = @transform_4, window_bounds = array<i64: 1, 256>}, {pipeline_mode = #tpu.pipeline_mode<synchronous>, transform_indices = @transform_5, window_bounds = array<i64: 256, 128>}, {pipeline_mode = #tpu.pipeline_mode<synchronous>, transform_indices = @transform_6, window_bounds = array<i64: 1, 128>}, {pipeline_mode = #tpu.pipeline_mode<synchronous>, transform_indices = @transform_7, window_bounds = array<i64: 128, 128>}, {pipeline_mode = #tpu.pipeline_mode<synchronous>, transform_indices = @transform_8, window_bounds = array<i64: 1, 128>}, {transform_indices = @transform_9, window_bounds = array<i64: 128, 128>}]} {
    %c0 = arith.constant 0 : index
    %c0_0 = arith.constant 0 : index
    %0 = vector.load %arg1[%c0, %c0_0] : memref<128x896xbf16, #tpu.memory_space<vmem>>, vector<128x896xbf16>
    %c0_1 = arith.constant 0 : index
    %c0_2 = arith.constant 0 : index
    %1 = vector.load %arg2[%c0_1, %c0_2] : memref<896x512xbf16, #tpu.memory_space<vmem>>, vector<896x512xbf16>
    %cst = arith.constant dense<0.000000e+00> : vector<128x512xf32>
    %2 = tpu.matmul %0, %1, %cst {dimension_numbers = #tpu.dot_dimension_numbers<[1], [0], [0], [1], [0, 0, 1, 1], [], []>} : vector<128x896xbf16>, vector<896x512xbf16>, vector<128x512xf32> -> vector<128x512xf32>
    %c0_3 = arith.constant 0 : index
    %c0_4 = arith.constant 0 : index
    %3 = vector.load %arg3[%c0_3, %c0_4] : memref<1x512xf32, #tpu.memory_space<vmem>>, vector<1x512xf32>
    %4 = vector.broadcast %3 : vector<1x512xf32> to vector<128x512xf32>
    %5 = arith.addf %2, %4 : vector<128x512xf32>
    %cst_5 = arith.constant 0.000000e+00 : f32
    %6 = vector.broadcast %cst_5 : f32 to vector<128x512xf32>
    %7 = arith.maximumf %5, %6 : vector<128x512xf32>
    %8 = arith.truncf %7 : vector<128x512xf32> to vector<128x512xbf16>
    %c0_6 = arith.constant 0 : index
    %c0_7 = arith.constant 0 : index
    %9 = vector.load %arg4[%c0_6, %c0_7] : memref<512x256xbf16, #tpu.memory_space<vmem>>, vector<512x256xbf16>
    %cst_8 = arith.constant dense<0.000000e+00> : vector<128x256xf32>
    %10 = tpu.matmul %8, %9, %cst_8 {dimension_numbers = #tpu.dot_dimension_numbers<[1], [0], [0], [1], [0, 0, 1, 1], [], []>} : vector<128x512xbf16>, vector<512x256xbf16>, vector<128x256xf32> -> vector<128x256xf32>
    %c0_9 = arith.constant 0 : index
    %c0_10 = arith.constant 0 : index
    %11 = vector.load %arg5[%c0_9, %c0_10] : memref<1x256xf32, #tpu.memory_space<vmem>>, vector<1x256xf32>
    %12 = vector.broadcast %11 : vector<1x256xf32> to vector<128x256xf32>
    %13 = arith.addf %10, %12 : vector<128x256xf32>
    %cst_11 = arith.constant 0.000000e+00 : f32
    %14 = vector.broadcast %cst_11 : f32 to vector<128x256xf32>
    %15 = arith.maximumf %13, %14 : vector<128x256xf32>
    %16 = arith.truncf %15 : vector<128x256xf32> to vector<128x256xbf16>
    %c0_12 = arith.constant 0 : index
    %c0_13 = arith.constant 0 : index
    %17 = vector.load %arg6[%c0_12, %c0_13] : memref<256x128xbf16, #tpu.memory_space<vmem>>, vector<256x128xbf16>
    %cst_14 = arith.constant dense<0.000000e+00> : vector<128x128xf32>
    %18 = tpu.matmul %16, %17, %cst_14 {dimension_numbers = #tpu.dot_dimension_numbers<[1], [0], [0], [1], [0, 0, 1, 1], [], []>} : vector<128x256xbf16>, vector<256x128xbf16>, vector<128x128xf32> -> vector<128x128xf32>
    %c0_15 = arith.constant 0 : index
    %c0_16 = arith.constant 0 : index
    %19 = vector.load %arg7[%c0_15, %c0_16] : memref<1x128xf32, #tpu.memory_space<vmem>>, vector<1x128xf32>
    %20 = vector.broadcast %19 : vector<1x128xf32> to vector<128x128xf32>
    %21 = arith.addf %18, %20 : vector<128x128xf32>
    %cst_17 = arith.constant 0.000000e+00 : f32
    %22 = vector.broadcast %cst_17 : f32 to vector<128x128xf32>
    %23 = arith.maximumf %21, %22 : vector<128x128xf32>
    %24 = arith.truncf %23 : vector<128x128xf32> to vector<128x128xbf16>
    %c0_18 = arith.constant 0 : index
    %c0_19 = arith.constant 0 : index
    %25 = vector.load %arg8[%c0_18, %c0_19] : memref<128x128xbf16, #tpu.memory_space<vmem>>, vector<128x128xbf16>
    %cst_20 = arith.constant dense<0.000000e+00> : vector<128x128xf32>
    %26 = tpu.matmul %24, %25, %cst_20 {dimension_numbers = #tpu.dot_dimension_numbers<[1], [0], [0], [1], [0, 0, 1, 1], [], []>} : vector<128x128xbf16>, vector<128x128xbf16>, vector<128x128xf32> -> vector<128x128xf32>
    %c0_21 = arith.constant 0 : index
    %c0_22 = arith.constant 0 : index
    %27 = vector.load %arg9[%c0_21, %c0_22] : memref<1x128xf32, #tpu.memory_space<vmem>>, vector<1x128xf32>
    %28 = vector.broadcast %27 : vector<1x128xf32> to vector<128x128xf32>
    %29 = arith.addf %26, %28 : vector<128x128xf32>
    %c0_23 = arith.constant 0 : index
    %c0_24 = arith.constant 0 : index
    %30 = vector.load %arg10[%c0_23, %c0_24] : memref<128x128xf32, #tpu.memory_space<vmem>>, vector<128x128xf32>
    tpu.vector_store %arg10[%c0_23, %c0_24], %29 {strides = array<i32>} : memref<128x128xf32, #tpu.memory_space<vmem>>, vector<128x128xf32>,
    return
  }
  func.func @transform_0(%arg0: i32) -> (i32, i32) {
    %c0_i32 = arith.constant 0 : i32
    %c0_i32_0 = arith.constant 0 : i32
    return %arg0, %c0_i32 : i32, i32
  }
  func.func @transform_1(%arg0: i32) -> (i32, i32) {
    %c0_i32 = arith.constant 0 : i32
    %c0_i32_0 = arith.constant 0 : i32
    %c0_i32_1 = arith.constant 0 : i32
    return %c0_i32, %c0_i32_0 : i32, i32
  }
  func.func @transform_2(%arg0: i32) -> (i32, i32) {
    %c0_i32 = arith.constant 0 : i32
    %c0_i32_0 = arith.constant 0 : i32
    %c0_i32_1 = arith.constant 0 : i32
    return %c0_i32, %c0_i32_0 : i32, i32
  }
  func.func @transform_3(%arg0: i32) -> (i32, i32) {
    %c0_i32 = arith.constant 0 : i32
    %c0_i32_0 = arith.constant 0 : i32
    %c0_i32_1 = arith.constant 0 : i32
    return %c0_i32, %c0_i32_0 : i32, i32
  }
  func.func @transform_4(%arg0: i32) -> (i32, i32) {
    %c0_i32 = arith.constant 0 : i32
    %c0_i32_0 = arith.constant 0 : i32
    %c0_i32_1 = arith.constant 0 : i32
    return %c0_i32, %c0_i32_0 : i32, i32
  }
  func.func @transform_5(%arg0: i32) -> (i32, i32) {
    %c0_i32 = arith.constant 0 : i32
    %c0_i32_0 = arith.constant 0 : i32
    %c0_i32_1 = arith.constant 0 : i32
    return %c0_i32, %c0_i32_0 : i32, i32
  }
  func.func @transform_6(%arg0: i32) -> (i32, i32) {
    %c0_i32 = arith.constant 0 : i32
    %c0_i32_0 = arith.constant 0 : i32
    %c0_i32_1 = arith.constant 0 : i32
    return %c0_i32, %c0_i32_0 : i32, i32
  }
  func.func @transform_7(%arg0: i32) -> (i32, i32) {
    %c0_i32 = arith.constant 0 : i32
    %c0_i32_0 = arith.constant 0 : i32
    %c0_i32_1 = arith.constant 0 : i32
    return %c0_i32, %c0_i32_0 : i32, i32
  }
  func.func @transform_8(%arg0: i32) -> (i32, i32) {
    %c0_i32 = arith.constant 0 : i32
    %c0_i32_0 = arith.constant 0 : i32
    %c0_i32_1 = arith.constant 0 : i32
    return %c0_i32, %c0_i32_0 : i32, i32
  }
  func.func @transform_9(%arg0: i32) -> (i32, i32) {
    %c0_i32 = arith.constant 0 : i32
    %c0_i32_0 = arith.constant 0 : i32
    return %arg0, %c0_i32 : i32, i32
  }
}

</mosaic_0001>

<bundles_post_ra>
// kernel: tpu_custom_call.1
= control target key start
LH: loop header
LB: loop body
LE: loop exit
PB: predicated region body
PF: predicated region fallthrough
CT: control target
= control target key end

     0   :  { %s6677_s0 = inlined_call_operand.hbm [shape: bf16[256,896], index: 0, kind: input, shape index: {}]   ;;  %s6678_s1 = inlined_call_operand.hbm [shape: bf16[896,512], index: 1, kind: input, shape index: {}]   ;;  %s6679_s2 = inlined_call_operand.vmem [shape: f32[1,512], index: 2, kind: input, shape index: {}]   ;;  %s6680_s3 = inlined_call_operand.hbm [shape: bf16[512,256], index: 3, kind: input, shape index: {}]   ;;  %s6681_s4 = inlined_call_operand.vmem [shape: f32[1,256], index: 4, kind: input, shape index: {}]   ;;  %s6682_s5 = inlined_call_operand.hbm [shape: bf16[256,128], index: 5, kind: input, shape index: {}]   ;;  %s6683_s6 = inlined_call_operand.vmem [shape: f32[1,128], index: 6, kind: input, shape index: {}]   ;;  %s6684_s7 = inlined_call_operand.hbm [shape: bf16[128,128], index: 7, kind: input, shape index: {}]   ;;  %s6685_s8 = inlined_call_operand.vmem [shape: f32[1,128], index: 8, kind: input, shape index: {}]   ;;  %s6686_s9 = inlined_call_operand.hbm [shape: f32[256,128], index: 9, kind: output, shape index: {}]  }
   0x1   :  { %6694 = sst [smem:[#allocation18_spill]] %s6678_s1 }
   0x2   :  { %14 = vsyncpa [#allocation3], 0 }
   0x3   :  { %16 = vsyncpa [#allocation3 + $0x1], 0 }
   0x4   :  { %17 = vsyncpa [#allocation6], 0 }
   0x5   :  { %18 = vsyncpa [#allocation9], 0 }
   0x6   :  { %19 = vsyncpa [#allocation4], 0 }
   0x7   :  { %21 = vsyncpa [#allocation4 + $0x1], 0  ;;  %s6112_s30 = smov 0   ;;  %s6114_s10 = smov 0  }
   0x8   :  { %s6116_s11 = smov 0   ;;  %s6118_s12 = smov 0  }
   0x9 LB: > { %6695 = sst [smem:[#allocation16_spill]] %s6031_s30  ;;  %s6133_s13 = sadd.s32 4294967295, %s6043_s12   ;;  %s6043_s12 = sphi %s6118_s12, %s6721_s12   ;;  %s6039_s11 = sphi %s6116_s11, %s6720_s11   ;;  %s6035_s10 = sphi %s6114_s10, %s6719_s10   ;;  %s6031_s30 = sphi %s6112_s30, %s6718_s30  }
   0xa   : > { %s4366_s14 = sadd.s32 4294967294, %s6043_s12   ;;  %p47_p0 = scmp.ne.s32.totalorder %s6035_s10, %s6031_s30 }
   0xb   : > { %p6687_p1 = scmp.eq.s32.totalorder %s6133_s13, 0  ;;  %p245_p3 = scmp.eq.s32.totalorder %s4366_s14, 1 }
   0xc   : > { %p4367_p5 = scmp.ge.s32.totalorder %s6043_s12, 1  ;;  %p252_p7 = scmp.lt.s32.totalorder %s6043_s12, 3 }
   0xd   : > { %p6142_p4 = por %p6687_p1, %p47_p0  ;;  %p6147_p6 = por %p245_p3, %p47_p0 }
   0xe   : > { %p6152_p8 = pnand %p4367_p5, %p252_p7  ;;  %s6045_s18 = smov [#allocation5]  }
   0xf   : > { %s6696_s15 = scalar_select %p6142_p4, 1, 0 }
  0x10   : > { %s6697_s16 = scalar_select %p6147_p6, 1, 0 }
  0x11   : > { %s6699_s17 = scalar_select %p6152_p8, 1, 0 }
  0x12   : > { %6698 = sst [smem:[#allocation17_spill]] %s6697_s16  ;;  %s264_s19 = sshll.u32 %s6045_s18, 4  ;;  %s6156_s19 = int_to_ptr.vmem [resolvable:$true] %s264_s19 }
  0x13   : > { %p5213_p9 = pneg %p6152_p8  ;;  %s6046_s21 = smov [#allocation8]  }
  0x14   : > { %s296_s22 = sshll.u32 %s6046_s21, 4  ;;  %s6701_s1 = sld [smem:[#allocation18_spill]]  ;;  %s6167_s22 = int_to_ptr.vmem [resolvable:$true] %s296_s22 }
  0x15   : > { %p6163_p11 = pnand %p5213_p9, %p6687_p1 }
  0x17   : > { %p6177_p13 = pneg %p6163_p11 }
  0x1a   : > { %s5827_s25 = scalar_lea.hbm %s6701_s1, 28672 }
  0x1b   : > { %p5828_p12 = scmp.ne.s32.totalorder %s6701_s1, %s5827_s25  ;;  %p5834_p5 = scmp.lt.u32.totalorder %s5827_s25, %s6701_s1 }
  0x1d   : > { %p5830_p0 = pnand %p6177_p13, %p5828_p12 }
  0x1f   : > { %p5831_p3 = pneg %p5830_p0 }
  0x21   : > { %p5836_p7 = pnand %p5834_p5, %p5831_p3 }
  0x23   : > { %5839 = shalt.err (!%p5836_p7)
}
  0x24   : > { %s5840_s18 = scalar_lea.vmem %s6156_s19, 28672  ;;  %p5848_p2 = scmp.lt.s32.totalorder %s6156_s19, %s6156_s19 }
  0x25   : > { %p5841_p9 = scmp.ne.s32.totalorder %s6156_s19, %s5840_s18  ;;  %p5849_p6 = scmp.lt.s32.totalorder %s5840_s18, %s5840_s18 }
  0x27   : > { %p5843_p10 = pnand %p5841_p9, %p6177_p13  ;;  %p5850_p12 = por %p5849_p6, %p5848_p2 }
  0x29   : > { %p5844_p1 = pneg %p5843_p10 }
  0x2b   : > { %p5851_p0 = pnand %p5850_p12, %p5844_p1 }
  0x2d   : > { %5854 = shalt.err (!%p5851_p0)
}
  0x2e   : > { %s6047_s21 = smov 256   ;;  %s6048_s23 = smov 16  }
  0x2f   : > { %5216 = dma.hbm_to_vmem [thread:$0]  (!%p6163_p11), %s6701_s1, 28672, %s6156_s19, [#allocation6], %s6047_s21, %s6047_s21, %s6048_s23  }
  0x30   : > { %s5855_s29 = scalar_lea.hbm %s6682_s5, 2048 }
  0x31   : > { %p5856_p2 = scmp.ne.s32.totalorder %s6682_s5, %s5855_s29  ;;  %p5862_p10 = scmp.lt.u32.totalorder %s5855_s29, %s6682_s5 }
  0x33   : > { %p5858_p1 = pnand %p5856_p2, %p6177_p13 }
  0x35   : > { %p5859_p6 = pneg %p5858_p1 }
  0x37   : > { %p5864_p3 = pnand %p5862_p10, %p5859_p6 }
  0x39   : > { %5867 = shalt.err (!%p5864_p3)
}
  0x3a   : > { %s5868_s19 = scalar_lea.vmem %s6167_s22, 2048  ;;  %p5876_p12 = scmp.lt.s32.totalorder %s6167_s22, %s6167_s22 }
  0x3b   : > { %p5869_p5 = scmp.ne.s32.totalorder %s6167_s22, %s5868_s19  ;;  %p5877_p0 = scmp.lt.s32.totalorder %s5868_s19, %s5868_s19 }
  0x3d   : > { %p5871_p7 = pnand %p5869_p5, %p6177_p13  ;;  %p5878_p2 = por %p5877_p0, %p5876_p12 }
  0x3f   : > { %p5872_p9 = pneg %p5871_p7 }
  0x41   : > { %p5879_p1 = pnand %p5878_p2, %p5872_p9 }
  0x43   : > { %5882 = shalt.err (!%p5879_p1)
}
  0x44   : > { %s6692_s16 = smov 64   ;;  %s6693_s30 = smov 4  }
  0x45   : > { %5222 = dma.hbm_to_vmem [thread:$0]  (!%p6163_p11), %s6682_s5, 2048, %s6167_s22, [#allocation9], %s6692_s16, %s6692_s16, %s6693_s30  }
  0x46   : > { %s6051_s24 = smov [#allocation7]   ;;  %s5883_s29 = scalar_lea.hbm %s6680_s3, 8192 }
  0x47   : > { %s280_s25 = sshll.u32 %s6051_s24, 4  ;;  %p5884_p6 = scmp.ne.s32.totalorder %s6680_s3, %s5883_s29  ;;  %s281_s25 = int_to_ptr.vmem [resolvable:$true] %s280_s25 }
  0x48   : > { %p5890_p5 = scmp.lt.u32.totalorder %s5883_s29, %s6680_s3 }
  0x49   : > { %p5886_p10 = pnand %p5884_p6, %p6177_p13 }
  0x4b   : > { %p5887_p3 = pneg %p5886_p10 }
  0x4d   : > { %p5892_p7 = pnand %p5890_p5, %p5887_p3 }
  0x4f   : > { %5895 = shalt.err (!%p5892_p7)
}
  0x50   : > { %s5896_s22 = scalar_lea.vmem %s281_s25, 8192  ;;  %p5904_p2 = scmp.lt.s32.totalorder %s281_s25, %s281_s25 }
  0x51   : > { %p5897_p9 = scmp.ne.s32.totalorder %s281_s25, %s5896_s22  ;;  %p5905_p1 = scmp.lt.s32.totalorder %s5896_s22, %s5896_s22 }
  0x53   : > { %p5899_p12 = pnand %p5897_p9, %p6177_p13  ;;  %p5906_p4 = por %p5905_p1, %p5904_p2 }
  0x55   : > { %p5900_p0 = pneg %p5899_p12 }
  0x57   : > { %p5907_p8 = pnand %p5906_p4, %p5900_p0 }
  0x59   : > { %5910 = shalt.err (!%p5907_p8)
}
  0x5a   : > { %s6052_s21 = smov 128   ;;  %s6053_s23 = smov 8  }
  0x5b   : > { %5219 = dma.hbm_to_vmem [thread:$0]  (!%p6163_p11), %s6680_s3, 8192, %s281_s25, [#allocation6], %s6052_s21, %s6052_s21, %s6053_s23  }
  0x5c   : > { %s6054_s26 = smov [#allocation10]   ;;  %s5911_s18 = scalar_lea.hbm %s6684_s7, 1024 }
  0x5d   : > { %s312_s27 = sshll.u32 %s6054_s26, 4  ;;  %p5912_p4 = scmp.ne.s32.totalorder %s6684_s7, %s5911_s18  ;;  %s313_s27 = int_to_ptr.vmem [resolvable:$true] %s312_s27 }
  0x5e   : > { %p5918_p10 = scmp.lt.u32.totalorder %s5911_s18, %s6684_s7 }
  0x5f   : > { %p5914_p8 = pnand %p5912_p4, %p6177_p13 }
  0x61   : > { %p5915_p6 = pneg %p5914_p8 }
  0x63   : > { %p5920_p3 = pnand %p5918_p10, %p5915_p6 }
  0x65   : > { %5923 = shalt.err (!%p5920_p3)
}
  0x66   : > { %s5924_s25 = scalar_lea.vmem %s313_s27, 1024  ;;  %p5932_p12 = scmp.lt.s32.totalorder %s313_s27, %s313_s27 }
  0x67   : > { %p5925_p5 = scmp.ne.s32.totalorder %s313_s27, %s5924_s25  ;;  %p5933_p0 = scmp.lt.s32.totalorder %s5924_s25, %s5924_s25 }
  0x69   : > { %p5927_p7 = pnand %p5925_p5, %p6177_p13  ;;  %p5934_p2 = por %p5933_p0, %p5932_p12 }
  0x6b   : > { %p5928_p9 = pneg %p5927_p7 }
  0x6d   : > { %p5935_p1 = pnand %p5934_p2, %p5928_p9 }
  0x6f   : > { %5938 = shalt.err (!%p5935_p1)
}
  0x70   : > { %s6703_s21 = smov 4   ;;  %s6704_s23 = smov 64  }
  0x71   : > { %5225 = dma.hbm_to_vmem [thread:$0]  (!%p6163_p11), %s6684_s7, 1024, %s313_s27, [#allocation9], %s6704_s23, %s6704_s23, %s6703_s21  }
  0x72   : > { %s6264_s28 = sadd.s32 1, %s6043_s12   ;;  %s34_s20 = sadd.s32 1, %s6039_s11 }
  0x73   : > { %s31_s1 = ssub.s32 %s6043_s12, %s6264_s28  ;;  %p41_p13 = scmp.ne.s32.totalorder %s6039_s11, %s6035_s10 }
  0x74   : > { %p32_p4 = scmp.eq.s32.totalorder %s31_s1, 0  ;;  %p42_p8 = scmp.eq.s32.totalorder %s6043_s12, 0 }
  0x75   : > { %p6705_p6 = scmp.eq.s32.totalorder %s6133_s13, 1  ;;  %p5238_p3 = scmp.lt.s32.totalorder %s6043_s12, 2 }
  0x76   : > { %s6280_s26 = scalar_select %p32_p4, %s6039_s11, %s34_s20  }
  0x77   : > { %p6274_p10 = por %p6705_p6, %p41_p13  ;;  %p43_p5 = por %p42_p8, %p41_p13 }
  0x78   : > { %s329_s29 = sand.u32 1, %s6039_s11   ;;  %s5191_s27 = smul.u32 7168, %s6043_s12 }
  0x79   : > { %s5190_s14 = smul.u32 448, %s329_s29  ;;  %p6284_p11 = pnand %p5238_p3, %p43_p5 }
  0x7a   : > { %s6291_s25 = scalar_lea.hbm %s6677_s0, %s5191_s27  ;;  %s6295_s16 = scalar_lea.sflag [#allocation3], %s329_s29 }
  0x7b   : > { %s333_s21 = scalar_lea.vmem [#allocation2], %s5190_s14  ;;  %s5939_s30 = scalar_lea.hbm %s6291_s25, 7168 }
  0x7c   : > { %s341_s23 = sshll.u32 %s333_s21, 4  ;;  %p5940_p7 = scmp.ne.s32.totalorder %s6291_s25, %s5939_s30  ;;  %s6293_s23 = int_to_ptr.vmem [resolvable:$true] %s341_s23 }
  0x7d   : > { %p5941_p9 = pneg %p6284_p11  ;;  %s5944_s27 = scalar_lea.hbm %s6677_s0, 14336 }
  0x7e   : > { %p5945_p2 = scmp.lt.u32.totalorder %s6291_s25, %s6677_s0  ;;  %p5946_p1 = scmp.lt.u32.totalorder %s5944_s27, %s5939_s30 }
  0x7f   : > { %p5942_p12 = pnand %p5941_p9, %p5940_p7  ;;  %p5948_p4 = scmp.lt.u32.totalorder %s5939_s30, %s6291_s25 }
  0x80   : > { %p5947_p13 = por %p5946_p1, %p5945_p2 }
  0x81   : > { %p5943_p0 = pneg %p5942_p12 }
  0x82   : > { %p5949_p8 = por %p5948_p4, %p5947_p13 }
  0x84   : > { %p5950_p6 = pnand %p5949_p8, %p5943_p0 }
  0x86   : > { %5953 = shalt.err (!%p5950_p6)
}
  0x87   : > { %s5954_s29 = scalar_lea.vmem %s6293_s23, 7168  ;;  %s6055_s14 = smov [#allocation2]  }
  0x88   : > { %p5955_p3 = scmp.ne.s32.totalorder %s6293_s23, %s5954_s29  ;;  %s5959_s21 = sshll.u32 %s6055_s14, 4  ;;  %s5960_s21 = int_to_ptr.vmem [resolvable:$false] %s5959_s21 }
  0x89   : > { %s5961_s20 = scalar_lea.vmem %s5960_s21, 14336  ;;  %p5962_p12 = scmp.lt.s32.totalorder %s6293_s23, %s5960_s21 }
  0x8a   : > { %p5957_p5 = pnand %p5955_p3, %p5941_p9  ;;  %p5963_p2 = scmp.lt.s32.totalorder %s5961_s20, %s5954_s29 }
  0x8c   : > { %p5958_p7 = pneg %p5957_p5  ;;  %p5964_p1 = por %p5963_p2, %p5962_p12 }
  0x8e   : > { %p5965_p13 = pnand %p5964_p1, %p5958_p7 }
  0x90   : > { %5968 = shalt.err (!%p5965_p13)
}
  0x91   : > { %s6056_s30 = smov 448   ;;  %s6057_s1 = smov 28  }
  0x92   : > { %5229 = dma.hbm_to_vmem [thread:$0]  (!%p6284_p11), %s6291_s25, 7168, %s6293_s23, %s6295_s16, %s6056_s30, %s6056_s30, %s6057_s1  }
  0x93   : > { %p6708_p9 = scmp.ne.s32.totalorder %s6699_s17, 0 }
  0x94   : > { %s6326_s27 = sand.u32 (!%p6708_p9), 1, %s6035_s10   ;;  %p6709_p0 = scmp.ne.s32.totalorder (!%p6708_p9), %s6696_s15, 0 }
  0x95   : > { %353 = sbr.rel (%p6708_p9) target bundleno = 1440 (0x5a0), region = 56  ;;  %s356_s22 = scalar_lea.sflag (!%p6708_p9), [#allocation3], %s6326_s27 }
  0x96   : > { %s5192_s19 = smul.u32 (!%p6708_p9), 448, %s6326_s27 }
  0x98   : > { %s6330_s29 = scalar_lea.vmem (!%p6708_p9), [#allocation2], %s5192_s19 }
  0x9c   : > { %6014 = dma.done.wait (%p6709_p0), %s356_s22, 7168  }
  0x9d   : > { %6016 = vsyncadd (%p6709_p0), %s356_s22, 4294960128  ;;  %p6710_p11 = scmp.eq.s32.totalorder %s6133_s13, 0 }
  0x9f   : > { %6018 = dma.done.wait (%p6710_p11), [#allocation6], 36864   ;;  %p6711_p4 = pmov %p6710_p11 }
  0xa1   : > { %6020 = vsyncadd (%p6711_p4), [#allocation6], 4294930432  ;;  %p6712_p8 = pmov %p6711_p4 }
  0xa2   : > { %p6713_p6 = pmov %p6711_p4 }
  0xa3   : > { %6022 = dma.done.wait (%p6712_p8), [#allocation9], 3072  }
  0xa4   : > { %6024 = vsyncadd (%p6713_p6), [#allocation9], 4294964224  ;;  %v5291_v0 = vld [vmem:[#allocation5 + $0x4] ss:$16 sps:$4 sm:$0xff]   ;;  %v5293_v1 = vld [vmem:[#allocation5 + $0xc] ss:$16 sps:$4 sm:$0xff]  }
  0xa5   : > { %2131 = vmatprep.subr.bf16.mxu0 %v5291_v0  ;;  %v5295_v2 = vld [vmem:[#allocation5] ss:$16 sps:$4 sm:$0xff]   ;;  %v5296_v3 = vld [vmem:[#allocation5 + $0x8] ss:$16 sps:$4 sm:$0xff]   ;;  %2583 = vmatprep.subr.bf16.mxu1 %v5293_v1  ;;  %v5297_v4 = vld [vmem:[#allocation5 + $0x24] ss:$16 sps:$4 sm:$0xff]  }
  0xa6   : > { %2132 = vmatpush1.bf16.msra.mxu0 %v5295_v2  ;;  %2584 = vmatpush1.bf16.msra.mxu1 %v5296_v3  ;;  %v5299_v5 = vld [vmem:[#allocation5 + $0x2c] ss:$16 sps:$4 sm:$0xff]   ;;  %v5301_v6 = vld [vmem:[#allocation5 + $0x20] ss:$16 sps:$4 sm:$0xff]   ;;  %v5302_v7 = vld [vmem:[#allocation5 + $0x28] ss:$16 sps:$4 sm:$0xff]  }
  0xa7   : > { %2133 = vmatprep.subr.bf16.mxu0 %v5297_v4  ;;  %2585 = vmatprep.subr.bf16.mxu1 %v5299_v5  ;;  %v5303_v8 = vld [vmem:[#allocation5 + $0x44] ss:$16 sps:$4 sm:$0xff]   ;;  %v5305_v9 = vld [vmem:[#allocation5 + $0x4c] ss:$16 sps:$4 sm:$0xff]   ;;  %v5307_v10 = vld [vmem:[#allocation5 + $0x40] ss:$16 sps:$4 sm:$0xff]  }
  0xa8   : > { %v5308_v11 = vld [vmem:[#allocation5 + $0x48] ss:$16 sps:$4 sm:$0xff]   ;;  %v5309_v12 = vld [vmem:[#allocation5 + $0x64] ss:$16 sps:$4 sm:$0xff]   ;;  %v5311_v13 = vld [vmem:[#allocation5 + $0x6c] ss:$16 sps:$4 sm:$0xff]  }
  0xa9   : > { %v5313_v14 = vld [vmem:[#allocation5 + $0x60] ss:$16 sps:$4 sm:$0xff]   ;;  %v5314_v15 = vld [vmem:[#allocation5 + $0x68] ss:$16 sps:$4 sm:$0xff]   ;;  %v5315_v16 = vld [vmem:[#allocation5 + $0x84] ss:$16 sps:$4 sm:$0xff]  }
  0xaa   : > { %2134 = vmatpush1.bf16.msra.mxu0 %v5301_v6  ;;  %2586 = vmatpush1.bf16.msra.mxu1 %v5302_v7  ;;  %v5317_v17 = vld [vmem:[#allocation5 + $0x8c] ss:$16 sps:$4 sm:$0xff]   ;;  %v5319_v18 = vld [vmem:[#allocation5 + $0x80] ss:$16 sps:$4 sm:$0xff]   ;;  %v5320_v19 = vld [vmem:[#allocation5 + $0x88] ss:$16 sps:$4 sm:$0xff]  }
  0xab   : > { %2135 = vmatprep.subr.bf16.mxu0 %v5303_v8  ;;  %2587 = vmatprep.subr.bf16.mxu1 %v5305_v9  ;;  %v5321_v20 = vld [vmem:[#allocation5 + $0xa4] ss:$16 sps:$4 sm:$0xff]   ;;  %v5323_v21 = vld [vmem:[#allocation5 + $0xac] ss:$16 sps:$4 sm:$0xff]   ;;  %v5325_v22 = vld [vmem:[#allocation5 + $0xa0] ss:$16 sps:$4 sm:$0xff]  }
  0xac   : > { %v5326_v23 = vld [vmem:[#allocation5 + $0xa8] ss:$16 sps:$4 sm:$0xff]   ;;  %v5327_v24 = vld [vmem:[#allocation5 + $0xc4] ss:$16 sps:$4 sm:$0xff]   ;;  %v5329_v25 = vld [vmem:[#allocation5 + $0xcc] ss:$16 sps:$4 sm:$0xff]  }
  0xad   : > { %v5331_v26 = vld [vmem:[#allocation5 + $0xc0] ss:$16 sps:$4 sm:$0xff]   ;;  %v5332_v27 = vld [vmem:[#allocation5 + $0xc8] ss:$16 sps:$4 sm:$0xff]   ;;  %v5333_v28 = vld [vmem:[#allocation5 + $0xe4] ss:$16 sps:$4 sm:$0xff]  }
  0xae   : > { %2136 = vmatpush1.bf16.msra.mxu0 %v5307_v10  ;;  %2588 = vmatpush1.bf16.msra.mxu1 %v5308_v11  ;;  %v5335_v29 = vld [vmem:[#allocation5 + $0xec] ss:$16 sps:$4 sm:$0xff]   ;;  %v5337_v30 = vld [vmem:[#allocation5 + $0xe0] ss:$16 sps:$4 sm:$0xff]   ;;  %v5338_v31 = vld [vmem:[#allocation5 + $0xe8] ss:$16 sps:$4 sm:$0xff]  }
  0xaf   : > { %2137 = vmatprep.subr.bf16.mxu0 %v5309_v12  ;;  %2589 = vmatprep.subr.bf16.mxu1 %v5311_v13  ;;  %v5339_v32 = vld [vmem:[#allocation5 + $0x104] ss:$16 sps:$4 sm:$0xff]   ;;  %v5341_v33 = vld [vmem:[#allocation5 + $0x10c] ss:$16 sps:$4 sm:$0xff]   ;;  %v5343_v34 = vld [vmem:[#allocation5 + $0x100] ss:$16 sps:$4 sm:$0xff]  }
  0xb0   : > { %v5344_v35 = vld [vmem:[#allocation5 + $0x108] ss:$16 sps:$4 sm:$0xff]   ;;  %v5345_v36 = vld [vmem:[#allocation5 + $0x124] ss:$16 sps:$4 sm:$0xff]   ;;  %v5347_v37 = vld [vmem:[#allocation5 + $0x12c] ss:$16 sps:$4 sm:$0xff]  }
  0xb1   : > { %v5349_v38 = vld [vmem:[#allocation5 + $0x120] ss:$16 sps:$4 sm:$0xff]   ;;  %v5350_v39 = vld [vmem:[#allocation5 + $0x128] ss:$16 sps:$4 sm:$0xff]   ;;  %v5351_v40 = vld [vmem:[#allocation5 + $0x144] ss:$16 sps:$4 sm:$0xff]  }
  0xb2   : > { %2138 = vmatpush1.bf16.msra.mxu0 %v5313_v14  ;;  %2590 = vmatpush1.bf16.msra.mxu1 %v5314_v15  ;;  %v5353_v41 = vld [vmem:[#allocation5 + $0x14c] ss:$16 sps:$4 sm:$0xff]   ;;  %v5355_v42 = vld [vmem:[#allocation5 + $0x140] ss:$16 sps:$4 sm:$0xff]   ;;  %v5356_v43 = vld [vmem:[#allocation5 + $0x148] ss:$16 sps:$4 sm:$0xff]  }
  0xb3   : > { %2139 = vmatprep.subr.bf16.mxu0 %v5315_v16  ;;  %2591 = vmatprep.subr.bf16.mxu1 %v5317_v17  ;;  %v5357_v44 = vld [vmem:[#allocation5 + $0x164] ss:$16 sps:$4 sm:$0xff]   ;;  %v5359_v45 = vld [vmem:[#allocation5 + $0x16c] ss:$16 sps:$4 sm:$0xff]   ;;  %v5361_v46 = vld [vmem:[#allocation5 + $0x160] ss:$16 sps:$4 sm:$0xff]  }
  0xb4   : > { %v5362_v47 = vld [vmem:[#allocation5 + $0x168] ss:$16 sps:$4 sm:$0xff]   ;;  %v5389_v48 = vld [vmem:[%s6330_s29 + $0x4] ss:$28 sps:$4 sm:$0xff]   ;;  %v5365_v50 = vld [vmem:[#allocation5 + $0x18c] ss:$16 sps:$4 sm:$0xff]  }
  0xb5   : > { %v5363_v49 = vld [vmem:[#allocation5 + $0x184] ss:$16 sps:$4 sm:$0xff]   ;;  %2163 = vmatprep.mubr.bf16.mxu0 %v5389_v48  ;;  %2615 = vmatprep.mubr.bf16.mxu1 %v5389_v48  ;;  %v5367_v51 = vld [vmem:[#allocation5 + $0x180] ss:$16 sps:$4 sm:$0xff]   ;;  %v5368_v52 = vld [vmem:[#allocation5 + $0x188] ss:$16 sps:$4 sm:$0xff]  }
  0xb6   : > { %2140 = vmatpush1.bf16.msra.mxu0 %v5319_v18  ;;  %2592 = vmatpush1.bf16.msra.mxu1 %v5320_v19  ;;  %v5369_v53 = vld [vmem:[#allocation5 + $0x1a4] ss:$16 sps:$4 sm:$0xff]   ;;  %v5371_v54 = vld [vmem:[#allocation5 + $0x1ac] ss:$16 sps:$4 sm:$0xff]   ;;  %v5373_v55 = vld [vmem:[#allocation5 + $0x1a0] ss:$16 sps:$4 sm:$0xff]  }
  0xb7   : > { %2141 = vmatprep.subr.bf16.mxu0 %v5321_v20  ;;  %2593 = vmatprep.subr.bf16.mxu1 %v5323_v21  ;;  %v5374_v56 = vld [vmem:[#allocation5 + $0x1a8] ss:$16 sps:$4 sm:$0xff]   ;;  %v5375_v57 = vld [vmem:[#allocation5 + $0x1c4] ss:$16 sps:$4 sm:$0xff]   ;;  %v5377_v58 = vld [vmem:[#allocation5 + $0x1cc] ss:$16 sps:$4 sm:$0xff]  }
  0xb8   : > { %v5379_v59 = vld [vmem:[#allocation5 + $0x1c0] ss:$16 sps:$4 sm:$0xff]   ;;  %v5380_v60 = vld [vmem:[#allocation5 + $0x1c8] ss:$16 sps:$4 sm:$0xff]   ;;  %v5381_v61 = vld [vmem:[#allocation5 + $0x1e4] ss:$16 sps:$4 sm:$0xff]  }
  0xb9   : > { %v5383_v62 = vld [vmem:[#allocation5 + $0x1ec] ss:$16 sps:$4 sm:$0xff]   ;;  %v5385_v63 = vld [vmem:[#allocation5 + $0x1e0] ss:$16 sps:$4 sm:$0xff]   ;;  %v5386_v0 = vld [vmem:[#allocation5 + $0x1e8] ss:$16 sps:$4 sm:$0xff]  }
  0xba   : > { %2142 = vmatpush1.bf16.msra.mxu0 %v5325_v22  ;;  %2594 = vmatpush1.bf16.msra.mxu1 %v5326_v23  ;;  %v5392_v1 = vld [vmem:[#allocation5 + $0x204] ss:$16 sps:$4 sm:$0xff]   ;;  %v5395_v2 = vld [vmem:[#allocation5 + $0x20c] ss:$16 sps:$4 sm:$0xff]   ;;  %v5390_v4 = vld [vmem:[#allocation5 + $0x200] ss:$16 sps:$4 sm:$0xff]  }
  0xbb   : > { %2143 = vmatprep.subr.bf16.mxu0 %v5327_v24  ;;  %2595 = vmatprep.subr.bf16.mxu1 %v5329_v25  ;;  %v5387_v3 = vld [vmem:[%s6330_s29] ss:$28 sps:$4 sm:$0xff]   ;;  %v5393_v5 = vld [vmem:[#allocation5 + $0x208] ss:$16 sps:$4 sm:$0xff]   ;;  %v5398_v6 = vld [vmem:[#allocation5 + $0x224] ss:$16 sps:$4 sm:$0xff]  }
  0xbc   : > { %v5401_v7 = vld [vmem:[#allocation5 + $0x22c] ss:$16 sps:$4 sm:$0xff]   ;;  %v5396_v9 = vld [vmem:[#allocation5 + $0x220] ss:$16 sps:$4 sm:$0xff]   ;;  %v5399_v10 = vld [vmem:[#allocation5 + $0x228] ss:$16 sps:$4 sm:$0xff]  }
  0xbd   : > { %v5402_v8 = vld [vmem:[%s6330_s29 + $0x3c] ss:$28 sps:$4 sm:$0xff]   ;;  %v5407_v11 = vld [vmem:[#allocation5 + $0x244] ss:$16 sps:$4 sm:$0xff]   ;;  %v5405_v14 = vld [vmem:[#allocation5 + $0x240] ss:$16 sps:$4 sm:$0xff]  }
  0xbe   : > { %2144 = vmatpush1.bf16.msra.mxu0 %v5331_v26  ;;  %2596 = vmatpush1.bf16.msra.mxu1 %v5332_v27  ;;  %v5410_v12 = vld [vmem:[#allocation5 + $0x24c] ss:$16 sps:$4 sm:$0xff]   ;;  %v5404_v13 = vld [vmem:[%s6330_s29 + $0x38] ss:$28 sps:$4 sm:$0xff]   ;;  %v5411_v19 = vld [vmem:[#allocation5 + $0x260] ss:$16 sps:$4 sm:$0xff]  }
  0xbf   : > { %2145 = vmatprep.subr.bf16.mxu0 %v5333_v28  ;;  %2597 = vmatprep.subr.bf16.mxu1 %v5335_v29  ;;  %v5408_v15 = vld [vmem:[#allocation5 + $0x248] ss:$16 sps:$4 sm:$0xff]   ;;  %v5413_v16 = vld [vmem:[#allocation5 + $0x264] ss:$16 sps:$4 sm:$0xff]   ;;  %v5416_v17 = vld [vmem:[#allocation5 + $0x26c] ss:$16 sps:$4 sm:$0xff]  }
  0xc0   : > { %v5417_v18 = vld [vmem:[%s6330_s29 + $0x74] ss:$28 sps:$4 sm:$0xff]   ;;  %v5414_v20 = vld [vmem:[#allocation5 + $0x268] ss:$16 sps:$4 sm:$0xff]   ;;  %v5425_v22 = vld [vmem:[#allocation5 + $0x28c] ss:$16 sps:$4 sm:$0xff]  }
  0xc1   : > { %v5422_v21 = vld [vmem:[#allocation5 + $0x284] ss:$16 sps:$4 sm:$0xff]   ;;  %v5419_v23 = vld [vmem:[%s6330_s29 + $0x70] ss:$28 sps:$4 sm:$0xff]   ;;  %v5423_v25 = vld [vmem:[#allocation5 + $0x288] ss:$16 sps:$4 sm:$0xff]  }
  0xc2   : > { %2146 = vmatpush1.bf16.msra.mxu0 %v5337_v30  ;;  %2598 = vmatpush1.bf16.msra.mxu1 %v5338_v31  ;;  %v5420_v24 = vld [vmem:[#allocation5 + $0x280] ss:$16 sps:$4 sm:$0xff]   ;;  %v5428_v26 = vld [vmem:[#allocation5 + $0x2a4] ss:$16 sps:$4 sm:$0xff]   ;;  %v5431_v27 = vld [vmem:[#allocation5 + $0x2ac] ss:$16 sps:$4 sm:$0xff]  }
  0xc3   : > { %2147 = vmatprep.subr.bf16.mxu0 %v5339_v32  ;;  %2599 = vmatprep.subr.bf16.mxu1 %v5341_v33  ;;  %v5432_v28 = vld [vmem:[%s6330_s29 + $0xac] ss:$28 sps:$4 sm:$0xff]   ;;  %v5426_v29 = vld [vmem:[#allocation5 + $0x2a0] ss:$16 sps:$4 sm:$0xff]   ;;  %v5437_v31 = vld [vmem:[#allocation5 + $0x2c4] ss:$16 sps:$4 sm:$0xff]  }
  0xc4   : > { %v5429_v30 = vld [vmem:[#allocation5 + $0x2a8] ss:$16 sps:$4 sm:$0xff]   ;;  %v5440_v32 = vld [vmem:[#allocation5 + $0x2cc] ss:$16 sps:$4 sm:$0xff]   ;;  %s4381_s14 = sshll.u32 %s6326_s27, 7  ;;  %s4757_s1 = sshll.u32 %s6133_s13, 11 }
  0xc5   : > { %v5434_v33 = vld [vmem:[%s6330_s29 + $0xa8] ss:$28 sps:$4 sm:$0xff]   ;;  %v5462_v48 = vld [vmem:[%s6330_s29 + $0x11c] ss:$28 sps:$4 sm:$0xff]   ;;  %s6608_s30 = scalar_lea.vmem [#allocation11], %s4381_s14  ;;  %s6628_s15 = scalar_lea.hbm %s6686_s9, %s4757_s1 }
  0xc6   : > { %2148 = vmatpush1.bf16.msra.mxu0 %v5343_v34  ;;  %2600 = vmatpush1.bf16.msra.mxu1 %v5344_v35  ;;  %v5435_v34 = vld [vmem:[#allocation5 + $0x2c0] ss:$16 sps:$4 sm:$0xff]   ;;  %v5438_v35 = vld [vmem:[#allocation5 + $0x2c8] ss:$16 sps:$4 sm:$0xff]   ;;  %s4255_s19 = sshll.u32 %s6608_s30, 4  ;;  %s4242_s13 = scalar_lea.sflag [#allocation4], %s6326_s27  ;;  %s6630_s19 = int_to_ptr.vmem [resolvable:$true] %s4255_s19 }
  0xc7   : > { %2149 = vmatprep.subr.bf16.mxu0 %v5345_v36  ;;  %2601 = vmatprep.subr.bf16.mxu1 %v5347_v37  ;;  %v5443_v36 = vld [vmem:[#allocation5 + $0x2e4] ss:$16 sps:$4 sm:$0xff]   ;;  %v5446_v37 = vld [vmem:[#allocation5 + $0x2ec] ss:$16 sps:$4 sm:$0xff]   ;;  %s5969_s17 = scalar_lea.vmem %s6630_s19, 2048  ;;  %s6059_s18 = smov [#allocation11]  }
  0xc8   : > { %p5970_p3 = scmp.ne.s32.totalorder %s6630_s19, %s5969_s17  ;;  %s5973_s25 = sshll.u32 %s6059_s18, 4  ;;  %s5974_s25 = int_to_ptr.vmem [resolvable:$false] %s5973_s25 }
  0xc9   : > { %s5975_s23 = scalar_lea.vmem %s5974_s25, 4096  ;;  %p5976_p12 = scmp.lt.s32.totalorder %s6630_s19, %s5974_s25 }
  0xca   : > { %2150 = vmatpush1.bf16.msra.mxu0 %v5349_v38  ;;  %2602 = vmatpush1.bf16.msra.mxu1 %v5350_v39  ;;  %v5447_v38 = vld [vmem:[%s6330_s29 + $0xe4] ss:$28 sps:$4 sm:$0xff]   ;;  %p5971_p5 = pnand %p5970_p3, %p6274_p10  ;;  %p5977_p2 = scmp.lt.s32.totalorder %s5975_s23, %s5969_s17 }
  0xcb   : > { %2151 = vmatprep.subr.bf16.mxu0 %v5351_v40  ;;  %2603 = vmatprep.subr.bf16.mxu1 %v5353_v41  ;;  %v5441_v39 = vld [vmem:[#allocation5 + $0x2e0] ss:$16 sps:$4 sm:$0xff]   ;;  %v5444_v40 = vld [vmem:[#allocation5 + $0x2e8] ss:$16 sps:$4 sm:$0xff]   ;;  %v5452_v41 = vld [vmem:[#allocation5 + $0x304] ss:$16 sps:$4 sm:$0xff]  }
  0xcc   : > { %p5972_p7 = pneg %p5971_p5  ;;  %p5978_p1 = por %p5977_p2, %p5976_p12 }
  0xce   : > { %2152 = vmatpush1.bf16.msra.mxu0 %v5355_v42  ;;  %2604 = vmatpush1.bf16.msra.mxu1 %v5356_v43  ;;  %v5455_v42 = vld [vmem:[#allocation5 + $0x30c] ss:$16 sps:$4 sm:$0xff]   ;;  %p5979_p13 = pnand %p5978_p1, %p5972_p7 }
  0xcf   : > { %2153 = vmatprep.subr.bf16.mxu0 %v5357_v44  ;;  %2605 = vmatprep.subr.bf16.mxu1 %v5359_v45  ;;  %v5449_v43 = vld [vmem:[%s6330_s29 + $0xe0] ss:$28 sps:$4 sm:$0xff]   ;;  %v5453_v45 = vld [vmem:[#allocation5 + $0x308] ss:$16 sps:$4 sm:$0xff]  }
  0xd0   : > { %v5450_v44 = vld [vmem:[#allocation5 + $0x300] ss:$16 sps:$4 sm:$0xff]  }
  0xd2   : > { %2154 = vmatpush1.bf16.msra.mxu0 %v5361_v46  ;;  %2606 = vmatpush1.bf16.msra.mxu1 %v5362_v47  ;;  %v5458_v46 = vld [vmem:[#allocation5 + $0x324] ss:$16 sps:$4 sm:$0xff]   ;;  %v5461_v47 = vld [vmem:[#allocation5 + $0x32c] ss:$16 sps:$4 sm:$0xff]  }
  0xd3   : > { %2155 = vmatprep.subr.bf16.mxu0 %v5363_v49  ;;  %2607 = vmatprep.subr.bf16.mxu1 %v5365_v50  ;;  %v5456_v49 = vld [vmem:[#allocation5 + $0x320] ss:$16 sps:$4 sm:$0xff]   ;;  %v5459_v50 = vld [vmem:[#allocation5 + $0x328] ss:$16 sps:$4 sm:$0xff]  }
  0xd6   : > { %2156 = vmatpush1.bf16.msra.mxu0 %v5367_v51  ;;  %2608 = vmatpush1.bf16.msra.mxu1 %v5368_v52  ;;  %v5467_v51 = vld [vmem:[#allocation5 + $0x344] ss:$16 sps:$4 sm:$0xff]   ;;  %v5470_v52 = vld [vmem:[#allocation5 + $0x34c] ss:$16 sps:$4 sm:$0xff]  }
  0xd7   : > { %2157 = vmatprep.subr.bf16.mxu0 %v5369_v53  ;;  %2609 = vmatprep.subr.bf16.mxu1 %v5371_v54  ;;  %v5464_v53 = vld [vmem:[%s6330_s29 + $0x118] ss:$28 sps:$4 sm:$0xff]   ;;  %v5465_v54 = vld [vmem:[#allocation5 + $0x340] ss:$16 sps:$4 sm:$0xff]  }
  0xda   : > { %2158 = vmatpush1.bf16.msra.mxu0 %v5373_v55  ;;  %2610 = vmatpush1.bf16.msra.mxu1 %v5374_v56  ;;  %v5468_v55 = vld [vmem:[#allocation5 + $0x348] ss:$16 sps:$4 sm:$0xff]   ;;  %v5473_v56 = vld [vmem:[#allocation5 + $0x364] ss:$16 sps:$4 sm:$0xff]  }
  0xdb   : > { %2159 = vmatprep.subr.bf16.mxu0 %v5375_v57  ;;  %2611 = vmatprep.subr.bf16.mxu1 %v5377_v58  ;;  %v5476_v57 = vld [vmem:[#allocation5 + $0x36c] ss:$16 sps:$4 sm:$0xff]   ;;  %v5477_v58 = vld [vmem:[%s6330_s29 + $0x154] ss:$28 sps:$4 sm:$0xff]  }
  0xde   : > { %2160 = vmatpush1.bf16.msra.mxu0 %v5379_v59  ;;  %2612 = vmatpush1.bf16.msra.mxu1 %v5380_v60  ;;  %v5471_v59 = vld [vmem:[#allocation5 + $0x360] ss:$16 sps:$4 sm:$0xff]   ;;  %v5474_v60 = vld [vmem:[#allocation5 + $0x368] ss:$16 sps:$4 sm:$0xff]  }
  0xdf   : > { %2161 = vmatprep.subr.bf16.mxu0 %v5381_v61  ;;  %2613 = vmatprep.subr.bf16.mxu1 %v5383_v62  ;;  %v5482_v61 = vld [vmem:[#allocation5 + $0x384] ss:$16 sps:$4 sm:$0xff]   ;;  %v5485_v62 = vld [vmem:[#allocation5 + $0x38c] ss:$16 sps:$4 sm:$0xff]  }
  0xe2   : > { %2162 = vmatpush1.bf16.msra.mxu0 %v5385_v63  ;;  %2614 = vmatpush1.bf16.msra.mxu1 %v5386_v0  ;;  %v5479_v63 = vld [vmem:[%s6330_s29 + $0x150] ss:$28 sps:$4 sm:$0xff]  }
  0xe3   : > { %2244 = vmatprep.subr.bf16.mxu0 %v5392_v1  ;;  %2696 = vmatprep.subr.bf16.mxu1 %v5395_v2  ;;  %v5480_v0 = vld [vmem:[#allocation5 + $0x380] ss:$16 sps:$4 sm:$0xff]   ;;  %v5483_v1 = vld [vmem:[#allocation5 + $0x388] ss:$16 sps:$4 sm:$0xff]   ;;  %v5488_v2 = vld [vmem:[#allocation5 + $0x3a4] ss:$16 sps:$4 sm:$0xff]  }
  0xe5   : > { %2164 = vmatmul.mubr.bf16.vlgmr.msra.gmra.mrb[0].mxu0 %v5387_v3  ;;  %2616 = vmatmul.mubr.bf16.vlgmr.msra.gmra.mrb[0].mxu1 %v5387_v3  ;;  %v5491_v3 = vld [vmem:[#allocation5 + $0x3ac] ss:$16 sps:$4 sm:$0xff]  }
  0xe6   : > { %2245 = vmatpush1.bf16.msra.mxu0 %v5390_v4  ;;  %2697 = vmatpush1.bf16.msra.mxu1 %v5393_v5  ;;  %v5492_v4 = vld [vmem:[%s6330_s29 + $0x18c] ss:$28 sps:$4 sm:$0xff]   ;;  %v5486_v5 = vld [vmem:[#allocation5 + $0x3a0] ss:$16 sps:$4 sm:$0xff]  }
  0xe7   : > { %2246 = vmatprep.subr.bf16.mxu0 %v5398_v6  ;;  %2698 = vmatprep.subr.bf16.mxu1 %v5401_v7  ;;  %v5489_v6 = vld [vmem:[#allocation5 + $0x3a8] ss:$16 sps:$4 sm:$0xff]   ;;  %v5497_v7 = vld [vmem:[#allocation5 + $0x3c4] ss:$16 sps:$4 sm:$0xff]  }
  0xe8   : > { %2173 = vmatprep.mubr.bf16.mxu0 %v5402_v8  ;;  %2625 = vmatprep.mubr.bf16.mxu1 %v5402_v8  ;;  %v5500_v8 = vld [vmem:[#allocation5 + $0x3cc] ss:$16 sps:$4 sm:$0xff]  }
  0xea   : > { %2247 = vmatpush1.bf16.msra.mxu0 %v5396_v9  ;;  %2699 = vmatpush1.bf16.msra.mxu1 %v5399_v10  ;;  %v5494_v9 = vld [vmem:[%s6330_s29 + $0x188] ss:$28 sps:$4 sm:$0xff]   ;;  %v5495_v10 = vld [vmem:[#allocation5 + $0x3c0] ss:$16 sps:$4 sm:$0xff]  }
  0xeb   : > { %2248 = vmatprep.subr.bf16.mxu0 %v5407_v11  ;;  %2700 = vmatprep.subr.bf16.mxu1 %v5410_v12  ;;  %v5498_v11 = vld [vmem:[#allocation5 + $0x3c8] ss:$16 sps:$4 sm:$0xff]   ;;  %v5503_v12 = vld [vmem:[#allocation5 + $0x3e4] ss:$16 sps:$4 sm:$0xff]  }
  0xed   : > { %2174 = vmatmul.mubr.bf16.gmra.mrb[4].mxu0 %v5404_v13  ;;  %2626 = vmatmul.mubr.bf16.gmra.mrb[4].mxu1 %v5404_v13  ;;  %v5506_v13 = vld [vmem:[#allocation5 + $0x3ec] ss:$16 sps:$4 sm:$0xff]  }
  0xee   : > { %2249 = vmatpush1.bf16.msra.mxu0 %v5405_v14  ;;  %2701 = vmatpush1.bf16.msra.mxu1 %v5408_v15  ;;  %v5509_v14 = vld [vmem:[%s6330_s29 + $0xc] ss:$28 sps:$4 sm:$0xff]   ;;  %v5501_v15 = vld [vmem:[#allocation5 + $0x3e0] ss:$16 sps:$4 sm:$0xff]  }
  0xef   : > { %2250 = vmatprep.subr.bf16.mxu0 %v5413_v16  ;;  %2702 = vmatprep.subr.bf16.mxu1 %v5416_v17  ;;  %v5504_v16 = vld [vmem:[#allocation5 + $0x3e8] ss:$16 sps:$4 sm:$0xff]   ;;  %v5512_v17 = vld [vmem:[#allocation5 + $0x404] ss:$16 sps:$4 sm:$0xff]  }
  0xf0   : > { %2183 = vmatprep.mubr.bf16.mxu0 %v5417_v18  ;;  %2635 = vmatprep.mubr.bf16.mxu1 %v5417_v18  ;;  %v5515_v18 = vld [vmem:[#allocation5 + $0x40c] ss:$16 sps:$4 sm:$0xff]  }
  0xf2   : > { %2251 = vmatpush1.bf16.msra.mxu0 %v5411_v19  ;;  %2703 = vmatpush1.bf16.msra.mxu1 %v5414_v20  ;;  %v5507_v19 = vld [vmem:[%s6330_s29 + $0x8] ss:$28 sps:$4 sm:$0xff]   ;;  %v5510_v20 = vld [vmem:[#allocation5 + $0x400] ss:$16 sps:$4 sm:$0xff]  }
  0xf3   : > { %2252 = vmatprep.subr.bf16.mxu0 %v5422_v21  ;;  %2704 = vmatprep.subr.bf16.mxu1 %v5425_v22  ;;  %v5513_v21 = vld [vmem:[#allocation5 + $0x408] ss:$16 sps:$4 sm:$0xff]   ;;  %v5518_v22 = vld [vmem:[#allocation5 + $0x424] ss:$16 sps:$4 sm:$0xff]  }
  0xf5   : > { %2184 = vmatmul.mubr.bf16.gmra.mrb[8].mxu0 %v5419_v23  ;;  %2636 = vmatmul.mubr.bf16.gmra.mrb[8].mxu1 %v5419_v23  ;;  %v5521_v23 = vld [vmem:[#allocation5 + $0x42c] ss:$16 sps:$4 sm:$0xff]  }
  0xf6   : > { %2253 = vmatpush1.bf16.msra.mxu0 %v5420_v24  ;;  %2705 = vmatpush1.bf16.msra.mxu1 %v5423_v25  ;;  %v5522_v24 = vld [vmem:[%s6330_s29 + $0x44] ss:$28 sps:$4 sm:$0xff]  }
  0xf7   : > { %2254 = vmatprep.subr.bf16.mxu0 %v5428_v26  ;;  %2706 = vmatprep.subr.bf16.mxu1 %v5431_v27  ;;  %v5516_v25 = vld [vmem:[#allocation5 + $0x420] ss:$16 sps:$4 sm:$0xff]   ;;  %v5519_v26 = vld [vmem:[#allocation5 + $0x428] ss:$16 sps:$4 sm:$0xff]   ;;  %v5527_v27 = vld [vmem:[#allocation5 + $0x444] ss:$16 sps:$4 sm:$0xff]  }
  0xf8   : > { %2193 = vmatprep.mubr.bf16.mxu0 %v5432_v28  ;;  %2645 = vmatprep.mubr.bf16.mxu1 %v5432_v28  ;;  %v5530_v28 = vld [vmem:[#allocation5 + $0x44c] ss:$16 sps:$4 sm:$0xff]  }
  0xfa   : > { %2255 = vmatpush1.bf16.msra.mxu0 %v5426_v29  ;;  %2707 = vmatpush1.bf16.msra.mxu1 %v5429_v30  ;;  %v5524_v29 = vld [vmem:[%s6330_s29 + $0x40] ss:$28 sps:$4 sm:$0xff]  }
  0xfb   : > { %2256 = vmatprep.subr.bf16.mxu0 %v5437_v31  ;;  %2708 = vmatprep.subr.bf16.mxu1 %v5440_v32  ;;  %v5525_v30 = vld [vmem:[#allocation5 + $0x440] ss:$16 sps:$4 sm:$0xff]   ;;  %v5528_v31 = vld [vmem:[#allocation5 + $0x448] ss:$16 sps:$4 sm:$0xff]   ;;  %v5533_v32 = vld [vmem:[#allocation5 + $0x464] ss:$16 sps:$4 sm:$0xff]  }
  0xfd   : > { %2194 = vmatmul.mubr.bf16.gmra.mrb[12].mxu0 %v5434_v33  ;;  %2646 = vmatmul.mubr.bf16.gmra.mrb[12].mxu1 %v5434_v33  ;;  %v5536_v33 = vld [vmem:[#allocation5 + $0x46c] ss:$16 sps:$4 sm:$0xff]  }
  0xfe   : > { %2257 = vmatpush1.bf16.msra.mxu0 %v5435_v34  ;;  %2709 = vmatpush1.bf16.msra.mxu1 %v5438_v35  ;;  %v5537_v34 = vld [vmem:[%s6330_s29 + $0x7c] ss:$28 sps:$4 sm:$0xff]   ;;  %v5531_v35 = vld [vmem:[#allocation5 + $0x460] ss:$16 sps:$4 sm:$0xff]  }
  0xff   : > { %2258 = vmatprep.subr.bf16.mxu0 %v5443_v36  ;;  %2710 = vmatprep.subr.bf16.mxu1 %v5446_v37  ;;  %v5534_v36 = vld [vmem:[#allocation5 + $0x468] ss:$16 sps:$4 sm:$0xff]   ;;  %v5542_v37 = vld [vmem:[#allocation5 + $0x484] ss:$16 sps:$4 sm:$0xff]  }
 0x100   : > { %2203 = vmatprep.mubr.bf16.mxu0 %v5447_v38  ;;  %2655 = vmatprep.mubr.bf16.mxu1 %v5447_v38  ;;  %v5545_v38 = vld [vmem:[#allocation5 + $0x48c] ss:$16 sps:$4 sm:$0xff]  }
 0x102   : > { %2259 = vmatpush1.bf16.msra.mxu0 %v5441_v39  ;;  %2711 = vmatpush1.bf16.msra.mxu1 %v5444_v40  ;;  %v5539_v39 = vld [vmem:[%s6330_s29 + $0x78] ss:$28 sps:$4 sm:$0xff]   ;;  %v5540_v40 = vld [vmem:[#allocation5 + $0x480] ss:$16 sps:$4 sm:$0xff]  }
 0x103   : > { %2260 = vmatprep.subr.bf16.mxu0 %v5452_v41  ;;  %2712 = vmatprep.subr.bf16.mxu1 %v5455_v42  ;;  %v5543_v41 = vld [vmem:[#allocation5 + $0x488] ss:$16 sps:$4 sm:$0xff]   ;;  %v5548_v42 = vld [vmem:[#allocation5 + $0x4a4] ss:$16 sps:$4 sm:$0xff]  }
 0x105   : > { %2204 = vmatmul.mubr.bf16.gmra.mrb[16].mxu0 %v5449_v43  ;;  %2656 = vmatmul.mubr.bf16.gmra.mrb[16].mxu1 %v5449_v43  ;;  %v5551_v43 = vld [vmem:[#allocation5 + $0x4ac] ss:$16 sps:$4 sm:$0xff]  }
 0x106   : > { %2261 = vmatpush1.bf16.msra.mxu0 %v5450_v44  ;;  %2713 = vmatpush1.bf16.msra.mxu1 %v5453_v45  ;;  %v5552_v44 = vld [vmem:[%s6330_s29 + $0xb4] ss:$28 sps:$4 sm:$0xff]  }
 0x107   : > { %2262 = vmatprep.subr.bf16.mxu0 %v5458_v46  ;;  %2714 = vmatprep.subr.bf16.mxu1 %v5461_v47  ;;  %v5546_v45 = vld [vmem:[#allocation5 + $0x4a0] ss:$16 sps:$4 sm:$0xff]   ;;  %v5549_v46 = vld [vmem:[#allocation5 + $0x4a8] ss:$16 sps:$4 sm:$0xff]   ;;  %v5557_v47 = vld [vmem:[#allocation5 + $0x4c4] ss:$16 sps:$4 sm:$0xff]  }
 0x108   : > { %2213 = vmatprep.mubr.bf16.mxu0 %v5462_v48  ;;  %2665 = vmatprep.mubr.bf16.mxu1 %v5462_v48  ;;  %v5560_v48 = vld [vmem:[#allocation5 + $0x4cc] ss:$16 sps:$4 sm:$0xff]  }
 0x10a   : > { %2263 = vmatpush1.bf16.msra.mxu0 %v5456_v49  ;;  %2715 = vmatpush1.bf16.msra.mxu1 %v5459_v50  ;;  %v5554_v49 = vld [vmem:[%s6330_s29 + $0xb0] ss:$28 sps:$4 sm:$0xff]  }
 0x10b   : > { %2264 = vmatprep.subr.bf16.mxu0 %v5467_v51  ;;  %2716 = vmatprep.subr.bf16.mxu1 %v5470_v52  ;;  %v5555_v50 = vld [vmem:[#allocation5 + $0x4c0] ss:$16 sps:$4 sm:$0xff]   ;;  %v5558_v51 = vld [vmem:[#allocation5 + $0x4c8] ss:$16 sps:$4 sm:$0xff]   ;;  %v5563_v52 = vld [vmem:[#allocation5 + $0x4e4] ss:$16 sps:$4 sm:$0xff]  }
 0x10d   : > { %2214 = vmatmul.mubr.bf16.gmra.mrb[20].mxu0 %v5464_v53  ;;  %2666 = vmatmul.mubr.bf16.gmra.mrb[20].mxu1 %v5464_v53  ;;  %v5566_v53 = vld [vmem:[#allocation5 + $0x4ec] ss:$16 sps:$4 sm:$0xff]  }
 0x10e   : > { %2265 = vmatpush1.bf16.msra.mxu0 %v5465_v54  ;;  %2717 = vmatpush1.bf16.msra.mxu1 %v5468_v55  ;;  %v5567_v54 = vld [vmem:[%s6330_s29 + $0xec] ss:$28 sps:$4 sm:$0xff]   ;;  %v5561_v55 = vld [vmem:[#allocation5 + $0x4e0] ss:$16 sps:$4 sm:$0xff]  }
 0x10f   : > { %2266 = vmatprep.subr.bf16.mxu0 %v5473_v56  ;;  %2718 = vmatprep.subr.bf16.mxu1 %v5476_v57  ;;  %v5564_v56 = vld [vmem:[#allocation5 + $0x4e8] ss:$16 sps:$4 sm:$0xff]   ;;  %v5572_v57 = vld [vmem:[#allocation5 + $0x504] ss:$16 sps:$4 sm:$0xff]  }
 0x110   : > { %2223 = vmatprep.mubr.bf16.mxu0 %v5477_v58  ;;  %2675 = vmatprep.mubr.bf16.mxu1 %v5477_v58  ;;  %v5575_v58 = vld [vmem:[#allocation5 + $0x50c] ss:$16 sps:$4 sm:$0xff]  }
 0x112   : > { %2267 = vmatpush1.bf16.msra.mxu0 %v5471_v59  ;;  %2719 = vmatpush1.bf16.msra.mxu1 %v5474_v60  ;;  %v5569_v59 = vld [vmem:[%s6330_s29 + $0xe8] ss:$28 sps:$4 sm:$0xff]   ;;  %v5570_v60 = vld [vmem:[#allocation5 + $0x500] ss:$16 sps:$4 sm:$0xff]  }
 0x113   : > { %2268 = vmatprep.subr.bf16.mxu0 %v5482_v61  ;;  %2720 = vmatprep.subr.bf16.mxu1 %v5485_v62  ;;  %v5573_v61 = vld [vmem:[#allocation5 + $0x508] ss:$16 sps:$4 sm:$0xff]   ;;  %v5578_v62 = vld [vmem:[#allocation5 + $0x524] ss:$16 sps:$4 sm:$0xff]  }
 0x115   : > { %2224 = vmatmul.mubr.bf16.gmra.mrb[24].mxu0 %v5479_v63  ;;  %2676 = vmatmul.mubr.bf16.gmra.mrb[24].mxu1 %v5479_v63  ;;  %v5581_v63 = vld [vmem:[#allocation5 + $0x52c] ss:$16 sps:$4 sm:$0xff]  }
 0x116   : > { %2269 = vmatpush1.bf16.msra.mxu0 %v5480_v0  ;;  %2721 = vmatpush1.bf16.msra.mxu1 %v5483_v1  ;;  %v5582_v0 = vld [vmem:[%s6330_s29 + $0x124] ss:$28 sps:$4 sm:$0xff]  }
 0x117   : > { %2270 = vmatprep.subr.bf16.mxu0 %v5488_v2  ;;  %2722 = vmatprep.subr.bf16.mxu1 %v5491_v3  ;;  %v5576_v1 = vld [vmem:[#allocation5 + $0x520] ss:$16 sps:$4 sm:$0xff]   ;;  %v5579_v2 = vld [vmem:[#allocation5 + $0x528] ss:$16 sps:$4 sm:$0xff]   ;;  %v5587_v3 = vld [vmem:[#allocation5 + $0x544] ss:$16 sps:$4 sm:$0xff]  }
 0x118   : > { %2233 = vmatprep.mubr.bf16.mxu0 %v5492_v4  ;;  %2685 = vmatprep.mubr.bf16.mxu1 %v5492_v4  ;;  %v5590_v4 = vld [vmem:[#allocation5 + $0x54c] ss:$16 sps:$4 sm:$0xff]  }
 0x11a   : > { %2271 = vmatpush1.bf16.msra.mxu0 %v5486_v5  ;;  %2723 = vmatpush1.bf16.msra.mxu1 %v5489_v6  ;;  %v5584_v5 = vld [vmem:[%s6330_s29 + $0x120] ss:$28 sps:$4 sm:$0xff]  }
 0x11b   : > { %2272 = vmatprep.subr.bf16.mxu0 %v5497_v7  ;;  %2724 = vmatprep.subr.bf16.mxu1 %v5500_v8  ;;  %v5585_v6 = vld [vmem:[#allocation5 + $0x540] ss:$16 sps:$4 sm:$0xff]   ;;  %v5588_v7 = vld [vmem:[#allocation5 + $0x548] ss:$16 sps:$4 sm:$0xff]   ;;  %v5593_v8 = vld [vmem:[#allocation5 + $0x564] ss:$16 sps:$4 sm:$0xff]  }
 0x11d   : > { %2234 = vmatmul.mubr.bf16.gmra.mrb[28].mxu0 %v5494_v9  ;;  %2686 = vmatmul.mubr.bf16.gmra.mrb[28].mxu1 %v5494_v9  ;;  %v5596_v9 = vld [vmem:[#allocation5 + $0x56c] ss:$16 sps:$4 sm:$0xff]  }
 0x11e   : > { %2273 = vmatpush1.bf16.msra.mxu0 %v5495_v10  ;;  %2725 = vmatpush1.bf16.msra.mxu1 %v5498_v11  ;;  %v5597_v10 = vld [vmem:[%s6330_s29 + $0x15c] ss:$28 sps:$4 sm:$0xff]   ;;  %v5591_v11 = vld [vmem:[#allocation5 + $0x560] ss:$16 sps:$4 sm:$0xff]  }
 0x11f   : > { %2274 = vmatprep.subr.bf16.mxu0 %v5503_v12  ;;  %2726 = vmatprep.subr.bf16.mxu1 %v5506_v13  ;;  %v5594_v12 = vld [vmem:[#allocation5 + $0x568] ss:$16 sps:$4 sm:$0xff]   ;;  %v5602_v13 = vld [vmem:[#allocation5 + $0x584] ss:$16 sps:$4 sm:$0xff]  }
 0x120   : > { %2276 = vmatprep.mubr.bf16.mxu0 %v5509_v14  ;;  %2728 = vmatprep.mubr.bf16.mxu1 %v5509_v14  ;;  %v5605_v14 = vld [vmem:[#allocation5 + $0x58c] ss:$16 sps:$4 sm:$0xff]  }
 0x122   : > { %2275 = vmatpush1.bf16.msra.mxu0 %v5501_v15  ;;  %2727 = vmatpush1.bf16.msra.mxu1 %v5504_v16  ;;  %v5599_v15 = vld [vmem:[%s6330_s29 + $0x158] ss:$28 sps:$4 sm:$0xff]   ;;  %v5600_v16 = vld [vmem:[#allocation5 + $0x580] ss:$16 sps:$4 sm:$0xff]  }
 0x123   : > { %2357 = vmatprep.subr.bf16.mxu0 %v5512_v17  ;;  %2809 = vmatprep.subr.bf16.mxu1 %v5515_v18  ;;  %v5603_v17 = vld [vmem:[#allocation5 + $0x588] ss:$16 sps:$4 sm:$0xff]   ;;  %v5608_v18 = vld [vmem:[#allocation5 + $0x5a4] ss:$16 sps:$4 sm:$0xff]  }
 0x125   : > { %2277 = vmatmul.mubr.bf16.vlgmr.msra.gmra.mrb[0].mxu0 %v5507_v19  ;;  %2729 = vmatmul.mubr.bf16.vlgmr.msra.gmra.mrb[0].mxu1 %v5507_v19  ;;  %v5611_v19 = vld [vmem:[#allocation5 + $0x5ac] ss:$16 sps:$4 sm:$0xff]  }
 0x126   : > { %2358 = vmatpush1.bf16.msra.mxu0 %v5510_v20  ;;  %2810 = vmatpush1.bf16.msra.mxu1 %v5513_v21  ;;  %v5612_v20 = vld [vmem:[%s6330_s29 + $0x194] ss:$28 sps:$4 sm:$0xff]  }
 0x127   : > { %2359 = vmatprep.subr.bf16.mxu0 %v5518_v22  ;;  %2811 = vmatprep.subr.bf16.mxu1 %v5521_v23  ;;  %v5606_v21 = vld [vmem:[#allocation5 + $0x5a0] ss:$16 sps:$4 sm:$0xff]   ;;  %v5609_v22 = vld [vmem:[#allocation5 + $0x5a8] ss:$16 sps:$4 sm:$0xff]   ;;  %v5617_v23 = vld [vmem:[#allocation5 + $0x5c4] ss:$16 sps:$4 sm:$0xff]  }
 0x128   : > { %2286 = vmatprep.mubr.bf16.mxu0 %v5522_v24  ;;  %2738 = vmatprep.mubr.bf16.mxu1 %v5522_v24  ;;  %v5614_v24 = vld [vmem:[%s6330_s29 + $0x190] ss:$28 sps:$4 sm:$0xff]  }
 0x12a   : > { %2360 = vmatpush1.bf16.msra.mxu0 %v5516_v25  ;;  %2812 = vmatpush1.bf16.msra.mxu1 %v5519_v26  ;;  %v5620_v25 = vld [vmem:[#allocation5 + $0x5cc] ss:$16 sps:$4 sm:$0xff]   ;;  %v5615_v26 = vld [vmem:[#allocation5 + $0x5c0] ss:$16 sps:$4 sm:$0xff]  }
 0x12b   : > { %2361 = vmatprep.subr.bf16.mxu0 %v5527_v27  ;;  %2813 = vmatprep.subr.bf16.mxu1 %v5530_v28  ;;  %v5618_v27 = vld [vmem:[#allocation5 + $0x5c8] ss:$16 sps:$4 sm:$0xff]   ;;  %v5623_v28 = vld [vmem:[#allocation5 + $0x5e4] ss:$16 sps:$4 sm:$0xff]  }
 0x12d   : > { %2287 = vmatmul.mubr.bf16.gmra.mrb[4].mxu0 %v5524_v29  ;;  %2739 = vmatmul.mubr.bf16.gmra.mrb[4].mxu1 %v5524_v29  ;;  %v5626_v29 = vld [vmem:[#allocation5 + $0x5ec] ss:$16 sps:$4 sm:$0xff]  }
 0x12e   : > { %2362 = vmatpush1.bf16.msra.mxu0 %v5525_v30  ;;  %2814 = vmatpush1.bf16.msra.mxu1 %v5528_v31  ;;  %v5621_v30 = vld [vmem:[#allocation5 + $0x5e0] ss:$16 sps:$4 sm:$0xff]  }
 0x12f   : > { %2363 = vmatprep.subr.bf16.mxu0 %v5533_v32  ;;  %2815 = vmatprep.subr.bf16.mxu1 %v5536_v33  ;;  %v5629_v31 = vld [vmem:[%s6330_s29 + $0x14] ss:$28 sps:$4 sm:$0xff]   ;;  %v5624_v32 = vld [vmem:[#allocation5 + $0x5e8] ss:$16 sps:$4 sm:$0xff]  }
 0x130   : > { %2296 = vmatprep.mubr.bf16.mxu0 %v5537_v34  ;;  %2748 = vmatprep.mubr.bf16.mxu1 %v5537_v34  ;;  %v5632_v33 = vld [vmem:[#allocation5 + $0x604] ss:$16 sps:$4 sm:$0xff]   ;;  %v5659_v34 = vld [vmem:[#allocation5 + $0x60c] ss:$16 sps:$4 sm:$0xff]  }
 0x132   : > { %2364 = vmatpush1.bf16.msra.mxu0 %v5531_v35  ;;  %2816 = vmatpush1.bf16.msra.mxu1 %v5534_v36  ;;  %v5627_v35 = vld [vmem:[%s6330_s29 + $0x10] ss:$28 sps:$4 sm:$0xff]  }
 0x133   : > { %2365 = vmatprep.subr.bf16.mxu0 %v5542_v37  ;;  %2817 = vmatprep.subr.bf16.mxu1 %v5545_v38  ;;  %v5630_v36 = vld [vmem:[#allocation5 + $0x600] ss:$16 sps:$4 sm:$0xff]   ;;  %v5633_v37 = vld [vmem:[%s6330_s29 + $0x4c] ss:$28 sps:$4 sm:$0xff]   ;;  %v5638_v38 = vld [vmem:[#allocation5 + $0x624] ss:$16 sps:$4 sm:$0xff]  }
 0x135   : > { %2297 = vmatmul.mubr.bf16.gmra.mrb[8].mxu0 %v5539_v39  ;;  %2749 = vmatmul.mubr.bf16.gmra.mrb[8].mxu1 %v5539_v39  ;;  %v5657_v39 = vld [vmem:[#allocation5 + $0x608] ss:$16 sps:$4 sm:$0xff]  }
 0x136   : > { %2366 = vmatpush1.bf16.msra.mxu0 %v5540_v40  ;;  %2818 = vmatpush1.bf16.msra.mxu1 %v5543_v41  ;;  %v5662_v40 = vld [vmem:[#allocation5 + $0x62c] ss:$16 sps:$4 sm:$0xff]   ;;  %v5636_v41 = vld [vmem:[#allocation5 + $0x620] ss:$16 sps:$4 sm:$0xff]  }
 0x137   : > { %2367 = vmatprep.subr.bf16.mxu0 %v5548_v42  ;;  %2819 = vmatprep.subr.bf16.mxu1 %v5551_v43  ;;  %v5644_v42 = vld [vmem:[#allocation5 + $0x644] ss:$16 sps:$4 sm:$0xff]   ;;  %v5660_v43 = vld [vmem:[#allocation5 + $0x628] ss:$16 sps:$4 sm:$0xff]  }
 0x138   : > { %2306 = vmatprep.mubr.bf16.mxu0 %v5552_v44  ;;  %2758 = vmatprep.mubr.bf16.mxu1 %v5552_v44  ;;  %v5635_v44 = vld [vmem:[%s6330_s29 + $0x48] ss:$28 sps:$4 sm:$0xff]  }
 0x13a   : > { %2368 = vmatpush1.bf16.msra.mxu0 %v5546_v45  ;;  %2820 = vmatpush1.bf16.msra.mxu1 %v5549_v46  ;;  %v5639_v45 = vld [vmem:[%s6330_s29 + $0x84] ss:$28 sps:$4 sm:$0xff]  }
 0x13b   : > { %2369 = vmatprep.subr.bf16.mxu0 %v5557_v47  ;;  %2821 = vmatprep.subr.bf16.mxu1 %v5560_v48  ;;  %v5642_v46 = vld [vmem:[#allocation5 + $0x640] ss:$16 sps:$4 sm:$0xff]   ;;  %v5671_v47 = vld [vmem:[#allocation5 + $0x64c] ss:$16 sps:$4 sm:$0xff]   ;;  %v5650_v48 = vld [vmem:[#allocation5 + $0x664] ss:$16 sps:$4 sm:$0xff]  }
 0x13d   : > { %2307 = vmatmul.mubr.bf16.gmra.mrb[12].mxu0 %v5554_v49  ;;  %2759 = vmatmul.mubr.bf16.gmra.mrb[12].mxu1 %v5554_v49  ;;  %v5669_v49 = vld [vmem:[#allocation5 + $0x648] ss:$16 sps:$4 sm:$0xff]  }
 0x13e   : > { %2370 = vmatpush1.bf16.msra.mxu0 %v5555_v50  ;;  %2822 = vmatpush1.bf16.msra.mxu1 %v5558_v51  ;;  %v5674_v50 = vld [vmem:[#allocation5 + $0x66c] ss:$16 sps:$4 sm:$0xff]  }
 0x13f   : > { %2371 = vmatprep.subr.bf16.mxu0 %v5563_v52  ;;  %2823 = vmatprep.subr.bf16.mxu1 %v5566_v53  ;;  %v5641_v51 = vld [vmem:[%s6330_s29 + $0x80] ss:$28 sps:$4 sm:$0xff]   ;;  %v5656_v53 = vld [vmem:[#allocation5 + $0x684] ss:$16 sps:$4 sm:$0xff]  }
 0x140   : > { %2316 = vmatprep.mubr.bf16.mxu0 %v5567_v54  ;;  %2768 = vmatprep.mubr.bf16.mxu1 %v5567_v54  ;;  %v5648_v52 = vld [vmem:[#allocation5 + $0x660] ss:$16 sps:$4 sm:$0xff]   ;;  %v5672_v54 = vld [vmem:[#allocation5 + $0x668] ss:$16 sps:$4 sm:$0xff]  }
 0x142   : > { %2372 = vmatpush1.bf16.msra.mxu0 %v5561_v55  ;;  %2824 = vmatpush1.bf16.msra.mxu1 %v5564_v56  ;;  %v5645_v55 = vld [vmem:[%s6330_s29 + $0xbc] ss:$28 sps:$4 sm:$0xff]   ;;  %v5654_v56 = vld [vmem:[#allocation5 + $0x680] ss:$16 sps:$4 sm:$0xff]  }
 0x143   : > { %2373 = vmatprep.subr.bf16.mxu0 %v5572_v57  ;;  %2825 = vmatprep.subr.bf16.mxu1 %v5575_v58  ;;  %v5668_v57 = vld [vmem:[#allocation5 + $0x6a4] ss:$16 sps:$4 sm:$0xff]   ;;  %v5681_v58 = vld [vmem:[#allocation5 + $0x688] ss:$16 sps:$4 sm:$0xff]  }
 0x145   : > { %2317 = vmatmul.mubr.bf16.gmra.mrb[16].mxu0 %v5569_v59  ;;  %2769 = vmatmul.mubr.bf16.gmra.mrb[16].mxu1 %v5569_v59  ;;  %v5683_v59 = vld [vmem:[#allocation5 + $0x68c] ss:$16 sps:$4 sm:$0xff]  }
 0x146   : > { %2374 = vmatpush1.bf16.msra.mxu0 %v5570_v60  ;;  %2826 = vmatpush1.bf16.msra.mxu1 %v5573_v61  ;;  %v5686_v60 = vld [vmem:[#allocation5 + $0x6ac] ss:$16 sps:$4 sm:$0xff]   ;;  %v5666_v61 = vld [vmem:[#allocation5 + $0x6a0] ss:$16 sps:$4 sm:$0xff]  }
 0x147   : > { %2375 = vmatprep.subr.bf16.mxu0 %v5578_v62  ;;  %2827 = vmatprep.subr.bf16.mxu1 %v5581_v63  ;;  %v5680_v62 = vld [vmem:[#allocation5 + $0x6c4] ss:$16 sps:$4 sm:$0xff]   ;;  %v5684_v63 = vld [vmem:[#allocation5 + $0x6a8] ss:$16 sps:$4 sm:$0xff]  }
 0x148   : > { %2326 = vmatprep.mubr.bf16.mxu0 %v5582_v0  ;;  %2778 = vmatprep.mubr.bf16.mxu1 %v5582_v0  ;;  %v5647_v0 = vld [vmem:[%s6330_s29 + $0xb8] ss:$28 sps:$4 sm:$0xff]  }
 0x14a   : > { %2376 = vmatpush1.bf16.msra.mxu0 %v5576_v1  ;;  %2828 = vmatpush1.bf16.msra.mxu1 %v5579_v2  ;;  %v5651_v1 = vld [vmem:[%s6330_s29 + $0xf4] ss:$28 sps:$4 sm:$0xff]  }
 0x14b   : > { %2377 = vmatprep.subr.bf16.mxu0 %v5587_v3  ;;  %2829 = vmatprep.subr.bf16.mxu1 %v5590_v4  ;;  %v5678_v2 = vld [vmem:[#allocation5 + $0x6c0] ss:$16 sps:$4 sm:$0xff]   ;;  %v5695_v3 = vld [vmem:[#allocation5 + $0x6cc] ss:$16 sps:$4 sm:$0xff]   ;;  %v5692_v4 = vld [vmem:[#allocation5 + $0x6e4] ss:$16 sps:$4 sm:$0xff]  }
 0x14d   : > { %2327 = vmatmul.mubr.bf16.gmra.mrb[20].mxu0 %v5584_v5  ;;  %2779 = vmatmul.mubr.bf16.gmra.mrb[20].mxu1 %v5584_v5  ;;  %v5693_v5 = vld [vmem:[#allocation5 + $0x6c8] ss:$16 sps:$4 sm:$0xff]  }
 0x14e   : > { %2378 = vmatpush1.bf16.msra.mxu0 %v5585_v6  ;;  %2830 = vmatpush1.bf16.msra.mxu1 %v5588_v7  ;;  %v5698_v6 = vld [vmem:[#allocation5 + $0x6ec] ss:$16 sps:$4 sm:$0xff]   ;;  %v5690_v7 = vld [vmem:[#allocation5 + $0x6e0] ss:$16 sps:$4 sm:$0xff]  }
 0x14f   : > { %2379 = vmatprep.subr.bf16.mxu0 %v5593_v8  ;;  %2831 = vmatprep.subr.bf16.mxu1 %v5596_v9  ;;  %v5696_v8 = vld [vmem:[#allocation5 + $0x6e8] ss:$16 sps:$4 sm:$0xff]   ;;  %v5709_v9 = vld [vmem:[#allocation7 + $0x4] ss:$8 sps:$4 sm:$0xff]  }
 0x150   : > { %2336 = vmatprep.mubr.bf16.mxu0 %v5597_v10  ;;  %2788 = vmatprep.mubr.bf16.mxu1 %v5597_v10  ;;  %v5653_v10 = vld [vmem:[%s6330_s29 + $0xf0] ss:$28 sps:$4 sm:$0xff]  }
 0x152   : > { %2380 = vmatpush1.bf16.msra.mxu0 %v5591_v11  ;;  %2832 = vmatpush1.bf16.msra.mxu1 %v5594_v12  ;;  %v5663_v11 = vld [vmem:[%s6330_s29 + $0x12c] ss:$28 sps:$4 sm:$0xff]  }
 0x153   : > { %2381 = vmatprep.subr.bf16.mxu0 %v5602_v13  ;;  %2833 = vmatprep.subr.bf16.mxu1 %v5605_v14  ;;  %v5665_v12 = vld [vmem:[%s6330_s29 + $0x128] ss:$28 sps:$4 sm:$0xff]   ;;  %v5677_v14 = vld [vmem:[%s6330_s29 + $0x160] ss:$28 sps:$4 sm:$0xff]  }
 0x154   : > { %v5675_v13 = vld [vmem:[%s6330_s29 + $0x164] ss:$28 sps:$4 sm:$0xff]  }
 0x155   : > { %2337 = vmatmul.mubr.bf16.gmra.mrb[24].mxu0 %v5599_v15  ;;  %2789 = vmatmul.mubr.bf16.gmra.mrb[24].mxu1 %v5599_v15  ;;  %v5687_v15 = vld [vmem:[%s6330_s29 + $0x19c] ss:$28 sps:$4 sm:$0xff]  }
 0x156   : > { %2382 = vmatpush1.bf16.msra.mxu0 %v5600_v16  ;;  %2834 = vmatpush1.bf16.msra.mxu1 %v5603_v17  ;;  %v5689_v16 = vld [vmem:[%s6330_s29 + $0x198] ss:$28 sps:$4 sm:$0xff]   ;;  %v6058_v17 = vmov 0  }
 0x157   : > { %2383 = vmatprep.subr.bf16.mxu0 %v5608_v18  ;;  %2835 = vmatprep.subr.bf16.mxu1 %v5611_v19  ;;  %v5699_v18 = vld [vmem:[%s6330_s29 + $0x18] ss:$28 sps:$4 sm:$0xff]   ;;  %v5707_v19 = vld [vmem:[#allocation7] ss:$8 sps:$4 sm:$0xff]  }
 0x158   : > { %2346 = vmatprep.mubr.bf16.mxu0 %v5612_v20  ;;  %2798 = vmatprep.mubr.bf16.mxu1 %v5612_v20  ;;  %v5712_v20 = vld [vmem:[#allocation7 + $0x14] ss:$8 sps:$4 sm:$0xff]  }
 0x15a   : > { %2384 = vmatpush1.bf16.msra.mxu0 %v5606_v21  ;;  %2836 = vmatpush1.bf16.msra.mxu1 %v5609_v22  ;;  %v5710_v21 = vld [vmem:[#allocation7 + $0x10] ss:$8 sps:$4 sm:$0xff]   ;;  %v5715_v22 = vld [vmem:[#allocation7 + $0x24] ss:$8 sps:$4 sm:$0xff]  }
 0x15b   : > { %2385 = vmatprep.subr.bf16.mxu0 %v5617_v23  ;;  %2837 = vmatprep.subr.bf16.mxu1 %v5620_v25  ;;  %v5700_v23 = vld [vmem:[%s6330_s29 + $0x50] ss:$28 sps:$4 sm:$0xff]   ;;  %v5718_v25 = vld [vmem:[#allocation7 + $0x34] ss:$8 sps:$4 sm:$0xff]  }
 0x15d   : > { %2347 = vmatmul.mubr.bf16.gmra.mrb[28].mxu0 %v5614_v24  ;;  %2799 = vmatmul.mubr.bf16.gmra.mrb[28].mxu1 %v5614_v24  ;;  %v5713_v24 = vld [vmem:[#allocation7 + $0x20] ss:$8 sps:$4 sm:$0xff]  }
 0x15e   : > { %2386 = vmatpush1.bf16.msra.mxu0 %v5615_v26  ;;  %2838 = vmatpush1.bf16.msra.mxu1 %v5618_v27  ;;  %v5716_v26 = vld [vmem:[#allocation7 + $0x30] ss:$8 sps:$4 sm:$0xff]   ;;  %v5721_v27 = vld [vmem:[#allocation7 + $0x44] ss:$8 sps:$4 sm:$0xff]  }
 0x15f   : > { %2387 = vmatprep.subr.bf16.mxu0 %v5623_v28  ;;  %2839 = vmatprep.subr.bf16.mxu1 %v5626_v29  ;;  %v5701_v28 = vld [vmem:[%s6330_s29 + $0x88] ss:$28 sps:$4 sm:$0xff]  }
 0x160   : > { %2389 = vmatprep.mubr.bf16.mxu0 %v5629_v31  ;;  %2841 = vmatprep.mubr.bf16.mxu1 %v5629_v31  ;;  %v5719_v29 = vld [vmem:[#allocation7 + $0x40] ss:$8 sps:$4 sm:$0xff]   ;;  %v5722_v31 = vld [vmem:[#allocation7 + $0x50] ss:$8 sps:$4 sm:$0xff]  }
 0x162   : > { %2388 = vmatpush1.bf16.msra.mxu0 %v5621_v30  ;;  %2840 = vmatpush1.bf16.msra.mxu1 %v5624_v32  ;;  %v5724_v30 = vld [vmem:[#allocation7 + $0x54] ss:$8 sps:$4 sm:$0xff]   ;;  %v5727_v32 = vld [vmem:[#allocation7 + $0x64] ss:$8 sps:$4 sm:$0xff]  }
 0x163   : > { %2470 = vmatprep.subr.bf16.mxu0 %v5632_v33  ;;  %2922 = vmatprep.subr.bf16.mxu1 %v5659_v34  ;;  %v5702_v33 = vld [vmem:[%s6330_s29 + $0xc0] ss:$28 sps:$4 sm:$0xff]  }
 0x164   : > { %v5725_v34 = vld [vmem:[#allocation7 + $0x60] ss:$8 sps:$4 sm:$0xff]  }
 0x165   : > { %2390 = vmatmul.mubr.bf16.vlgmr.msra.gmra.mrb[0].mxu0 %v5627_v35  ;;  %2842 = vmatmul.mubr.bf16.vlgmr.msra.gmra.mrb[0].mxu1 %v5627_v35  ;;  %v5730_v35 = vld [vmem:[#allocation7 + $0x74] ss:$8 sps:$4 sm:$0xff]  }
 0x166   : > { %2471 = vmatpush1.bf16.msra.mxu0 %v5630_v36  ;;  %2399 = vmatprep.mubr.bf16.mxu0 %v5633_v37  ;;  %v5728_v36 = vld [vmem:[#allocation7 + $0x70] ss:$8 sps:$4 sm:$0xff]  }
 0x167   : > { %2851 = vmatprep.mubr.bf16.mxu1 %v5633_v37  ;;  %2472 = vmatprep.subr.bf16.mxu0 %v5638_v38  ;;  %v5733_v37 = vld [vmem:[#allocation7 + $0x84] ss:$8 sps:$4 sm:$0xff]   ;;  %v5703_v38 = vld [vmem:[%s6330_s29 + $0xf8] ss:$28 sps:$4 sm:$0xff]  }
 0x168   : > { %2923 = vmatpush1.bf16.msra.mxu1 %v5657_v39  ;;  %v5731_v39 = vld [vmem:[#allocation7 + $0x80] ss:$8 sps:$4 sm:$0xff]  }
 0x169   : > { %2924 = vmatprep.subr.bf16.mxu1 %v5662_v40  ;;  %v5736_v40 = vld [vmem:[#allocation7 + $0x94] ss:$8 sps:$4 sm:$0xff]  }
 0x16a   : > { %2473 = vmatpush1.bf16.msra.mxu0 %v5636_v41  ;;  %v5734_v41 = vld [vmem:[#allocation7 + $0x90] ss:$8 sps:$4 sm:$0xff]  }
 0x16b   : > { %2474 = vmatprep.subr.bf16.mxu0 %v5644_v42  ;;  %v5739_v42 = vld [vmem:[#allocation7 + $0xa4] ss:$8 sps:$4 sm:$0xff]  }
 0x16c   : > { %2925 = vmatpush1.bf16.msra.mxu1 %v5660_v43  ;;  %v5704_v43 = vld [vmem:[%s6330_s29 + $0x130] ss:$28 sps:$4 sm:$0xff]  }
 0x16d   : > { %2400 = vmatmul.mubr.bf16.gmra.mrb[4].mxu0 %v5635_v44  ;;  %2852 = vmatmul.mubr.bf16.gmra.mrb[4].mxu1 %v5635_v44  ;;  %v5737_v44 = vld [vmem:[#allocation7 + $0xa0] ss:$8 sps:$4 sm:$0xff]  }
 0x16e   : > { %2409 = vmatprep.mubr.bf16.mxu0 %v5639_v45  ;;  %2861 = vmatprep.mubr.bf16.mxu1 %v5639_v45  ;;  %v5742_v45 = vld [vmem:[#allocation7 + $0xb4] ss:$8 sps:$4 sm:$0xff]  }
 0x16f   : > { %2475 = vmatpush1.bf16.msra.mxu0 %v5642_v46  ;;  %2926 = vmatprep.subr.bf16.mxu1 %v5671_v47  ;;  %v5740_v46 = vld [vmem:[#allocation7 + $0xb0] ss:$8 sps:$4 sm:$0xff]   ;;  %v5745_v47 = vld [vmem:[#allocation7 + $0xc4] ss:$8 sps:$4 sm:$0xff]  }
 0x170   : > { %2476 = vmatprep.subr.bf16.mxu0 %v5650_v48  ;;  %2927 = vmatpush1.bf16.msra.mxu1 %v5669_v49  ;;  %v5705_v48 = vld [vmem:[%s6330_s29 + $0x168] ss:$28 sps:$4 sm:$0xff]  }
 0x171   : > { %2928 = vmatprep.subr.bf16.mxu1 %v5674_v50  ;;  %v5743_v49 = vld [vmem:[#allocation7 + $0xc0] ss:$8 sps:$4 sm:$0xff]   ;;  %v5748_v50 = vld [vmem:[#allocation7 + $0xd4] ss:$8 sps:$4 sm:$0xff]  }
 0x173   : > { %2477 = vmatpush1.bf16.msra.mxu0 %v5648_v52  ;;  %v5706_v52 = vld [vmem:[%s6330_s29 + $0x1a0] ss:$28 sps:$4 sm:$0xff]  }
 0x174   : > { %2478 = vmatprep.subr.bf16.mxu0 %v5656_v53  ;;  %2929 = vmatpush1.bf16.msra.mxu1 %v5672_v54  ;;  %v5751_v53 = vld [vmem:[#allocation7 + $0xe4] ss:$8 sps:$4 sm:$0xff]   ;;  %v5749_v54 = vld [vmem:[#allocation7 + $0xe0] ss:$8 sps:$4 sm:$0xff]  }
 0x175   : > { %2410 = vmatmul.mubr.bf16.gmra.mrb[8].mxu0 %v5641_v51  ;;  %2862 = vmatmul.mubr.bf16.gmra.mrb[8].mxu1 %v5641_v51  ;;  %v5746_v51 = vld [vmem:[#allocation7 + $0xd0] ss:$8 sps:$4 sm:$0xff]  }
 0x176   : > { %2419 = vmatprep.mubr.bf16.mxu0 %v5645_v55  ;;  %2871 = vmatprep.mubr.bf16.mxu1 %v5645_v55  ;;  %v5754_v55 = vld [vmem:[#allocation7 + $0xf4] ss:$8 sps:$4 sm:$0xff]  }
 0x177   : > { %2479 = vmatpush1.bf16.msra.mxu0 %v5654_v56  ;;  %2930 = vmatprep.subr.bf16.mxu1 %v5683_v59  ;;  %v5752_v56 = vld [vmem:[#allocation7 + $0xf0] ss:$8 sps:$4 sm:$0xff]  }
 0x178   : > { %2480 = vmatprep.subr.bf16.mxu0 %v5668_v57  ;;  %2931 = vmatpush1.bf16.msra.mxu1 %v5681_v58  ;;  %v5757_v57 = vld [vmem:[#allocation7 + $0x104] ss:$8 sps:$4 sm:$0xff]   ;;  %v703_v58 = vlaneseq }
 0x179   : > { %2932 = vmatprep.subr.bf16.mxu1 %v5686_v60 }
 0x17a   : > { %v6416_v59 = vshrl.u32 %v703_v58, 7  ;;  %v5758_v58 = vld [vmem:[#allocation7 + $0x110] ss:$8 sps:$4 sm:$0xff]  }
 0x17b   : > { %2481 = vmatpush1.bf16.msra.mxu0 %v5666_v61 }
 0x17c   : > { %2482 = vmatprep.subr.bf16.mxu0 %v5680_v62  ;;  %2933 = vmatpush1.bf16.msra.mxu1 %v5684_v63  ;;  %v705_v60 = vsub.s32 0, %v6416_v59  ;;  %v713_v61 = vsub.s32 2, %v6416_v59  ;;  %v701_v62 = vld [vmem:[%s6679_s2] sm:$0xf]  ;;  %v709_v63 = vsub.s32 1, %v6416_v59 }
 0x17d   : > { %2420 = vmatmul.mubr.bf16.gmra.mrb[12].mxu0 %v5647_v0  ;;  %2872 = vmatmul.mubr.bf16.gmra.mrb[12].mxu1 %v5647_v0  ;;  %v717_v0 = vsub.s32 3, %v6416_v59 }
 0x17e   : > { %2429 = vmatprep.mubr.bf16.mxu0 %v5651_v1  ;;  %2881 = vmatprep.mubr.bf16.mxu1 %v5651_v1  ;;  %v6427_v1 = vrot.slane %v701_v62, %v705_v60 }
 0x17f   : > { %2483 = vmatpush1.bf16.msra.mxu0 %v5678_v2  ;;  %2934 = vmatprep.subr.bf16.mxu1 %v5695_v3  ;;  %v6429_v2 = vrot.slane %v701_v62, %v713_v61  ;;  %v6433_v3 = vrot.slane %v701_v62, %v709_v63 }
 0x180   : > { %2484 = vmatprep.subr.bf16.mxu0 %v5692_v4  ;;  %2935 = vmatpush1.bf16.msra.mxu1 %v5693_v5  ;;  %v6435_v4 = vrot.slane %v701_v62, %v717_v0 }
 0x181   : > { %2936 = vmatprep.subr.bf16.mxu1 %v5698_v6 }
 0x183   : > { %2485 = vmatpush1.bf16.msra.mxu0 %v5690_v7 }
 0x184   : > { %2937 = vmatpush1.bf16.msra.mxu1 %v5696_v8  ;;  %3527 = vmatprep.subr.bf16.mxu0 %v5709_v9 }
 0x185   : > { %2430 = vmatmul.mubr.bf16.gmra.mrb[16].mxu0 %v5653_v10  ;;  %2882 = vmatmul.mubr.bf16.gmra.mrb[16].mxu1 %v5653_v10 }
 0x186   : > { %2439 = vmatprep.mubr.bf16.mxu0 %v5663_v11  ;;  %2891 = vmatprep.mubr.bf16.mxu1 %v5663_v11 }
 0x18d   : > { %2440 = vmatmul.mubr.bf16.gmra.mrb[20].mxu0 %v5665_v12  ;;  %2892 = vmatmul.mubr.bf16.gmra.mrb[20].mxu1 %v5665_v12 }
 0x18e   : > { %2449 = vmatprep.mubr.bf16.mxu0 %v5675_v13  ;;  %2901 = vmatprep.mubr.bf16.mxu1 %v5675_v13 }
 0x195   : > { %2450 = vmatmul.mubr.bf16.gmra.mrb[24].mxu0 %v5677_v14  ;;  %2902 = vmatmul.mubr.bf16.gmra.mrb[24].mxu1 %v5677_v14 }
 0x196   : > { %2459 = vmatprep.mubr.bf16.mxu0 %v5687_v15  ;;  %2911 = vmatprep.mubr.bf16.mxu1 %v5687_v15 }
 0x19d   : > { %2460 = vmatmul.mubr.bf16.gmra.mrb[28].mxu0 %v5689_v16  ;;  %2912 = vmatmul.mubr.bf16.gmra.mrb[28].mxu1 %v5689_v16 }
 0x19e   : > { %2502 = vmatprep.mubr.bf16.mxu0 %v6058_v17  ;;  %2954 = vmatprep.mubr.bf16.mxu1 %v6058_v17 }
 0x1a5   : > { %2503 = vmatmul.mubr.bf16.vlgmr.msra.gmra.mrb[0].mxu0 %v5699_v18  ;;  %2955 = vmatmul.mubr.bf16.vlgmr.msra.gmra.mrb[0].mxu1 %v5699_v18 }
 0x1a6   : > { %2512 = vmatprep.mubr.bf16.mxu0 %v6058_v17  ;;  %2964 = vmatprep.mubr.bf16.mxu1 %v6058_v17 }
 0x1a7   : > { %3528 = vmatpush1.bf16.msra.mxu0 %v5707_v19  ;;  %v5803_v19 = vld [vmem:[#allocation8 + $0x40] sm:$0xff]  }
 0x1a8   : > { %3529 = vmatprep.subr.bf16.mxu0 %v5712_v20  ;;  %v5804_v20 = vld [vmem:[#allocation8] sm:$0xff]   ;;  %4758 = vmatprep.subr.bf16.mxu1 %v5803_v19 }
 0x1a9   : > { %4759 = vmatpush3.bf16.msra.mxu1 %v5804_v20  ;;  %v5761_v19 = vld [vmem:[#allocation7 + $0x120] ss:$8 sps:$4 sm:$0xff]  }
 0x1ab   : > { %3530 = vmatpush1.bf16.msra.mxu0 %v5710_v21 }
 0x1ac   : > { %3531 = vmatprep.subr.bf16.mxu0 %v5715_v22 }
 0x1ad   : > { %2513 = vmatmul.mubr.bf16.gmra.mrb[4].mxu0 %v5700_v23  ;;  %2965 = vmatmul.mubr.bf16.gmra.mrb[4].mxu1 %v5700_v23  ;;  %v5805_v23 = vld [vmem:[#allocation8 + $0x48] sm:$0xff]  }
 0x1ae   : > { %2522 = vmatprep.mubr.bf16.mxu0 %v6058_v17  ;;  %2974 = vmatprep.mubr.bf16.mxu1 %v6058_v17 }
 0x1af   : > { %3532 = vmatpush1.bf16.msra.mxu0 %v5713_v24  ;;  %4760 = vmatprep.subr.bf16.mxu1 %v5805_v23 }
 0x1b0   : > { %3533 = vmatprep.subr.bf16.mxu0 %v5718_v25 }
 0x1b3   : > { %3534 = vmatpush1.bf16.msra.mxu0 %v5716_v26 }
 0x1b4   : > { %3535 = vmatprep.subr.bf16.mxu0 %v5721_v27 }
 0x1b5   : > { %2523 = vmatmul.mubr.bf16.gmra.mrb[8].mxu0 %v5701_v28  ;;  %2975 = vmatmul.mubr.bf16.gmra.mrb[8].mxu1 %v5701_v28 }
 0x1b6   : > { %2532 = vmatprep.mubr.bf16.mxu0 %v6058_v17  ;;  %2984 = vmatprep.mubr.bf16.mxu1 %v6058_v17 }
 0x1b7   : > { %3536 = vmatpush1.bf16.msra.mxu0 %v5719_v29 }
 0x1b8   : > { %3537 = vmatprep.subr.bf16.mxu0 %v5724_v30 }
 0x1bb   : > { %3538 = vmatpush1.bf16.msra.mxu0 %v5722_v31 }
 0x1bc   : > { %3539 = vmatprep.subr.bf16.mxu0 %v5727_v32  ;;  %v5806_v32 = vld [vmem:[#allocation8 + $0x8] sm:$0xff]  }
 0x1bd   : > { %2533 = vmatmul.mubr.bf16.gmra.mrb[12].mxu0 %v5702_v33  ;;  %2985 = vmatmul.mubr.bf16.gmra.mrb[12].mxu1 %v5702_v33 }
 0x1be   : > { %2542 = vmatprep.mubr.bf16.mxu0 %v6058_v17  ;;  %2994 = vmatprep.mubr.bf16.mxu1 %v6058_v17 }
 0x1bf   : > { %3540 = vmatpush1.bf16.msra.mxu0 %v5725_v34  ;;  %4761 = vmatpush3.bf16.msra.mxu1 %v5806_v32 }
 0x1c0   : > { %3541 = vmatprep.subr.bf16.mxu0 %v5730_v35  ;;  %v5807_v35 = vld [vmem:[#allocation8 + $0x50] sm:$0xff]  }
 0x1c1   : > { %4762 = vmatprep.subr.bf16.mxu1 %v5807_v35  ;;  %v5813_v35 = vld [vmem:[#allocation8 + $0x68] sm:$0xff]  }
 0x1c3   : > { %3542 = vmatpush1.bf16.msra.mxu0 %v5728_v36 }
 0x1c4   : > { %3543 = vmatprep.subr.bf16.mxu0 %v5733_v37 }
 0x1c5   : > { %2543 = vmatmul.mubr.bf16.gmra.mrb[16].mxu0 %v5703_v38  ;;  %2995 = vmatmul.mubr.bf16.gmra.mrb[16].mxu1 %v5703_v38 }
 0x1c6   : > { %2552 = vmatprep.mubr.bf16.mxu0 %v6058_v17  ;;  %3004 = vmatprep.mubr.bf16.mxu1 %v6058_v17 }
 0x1c7   : > { %3544 = vmatpush1.bf16.msra.mxu0 %v5731_v39 }
 0x1c8   : > { %3545 = vmatprep.subr.bf16.mxu0 %v5736_v40  ;;  %v5755_v40 = vld [vmem:[#allocation7 + $0x100] ss:$8 sps:$4 sm:$0xff]  }
 0x1cb   : > { %3546 = vmatpush1.bf16.msra.mxu0 %v5734_v41 }
 0x1cc   : > { %3547 = vmatprep.subr.bf16.mxu0 %v5739_v42 }
 0x1cd   : > { %2553 = vmatmul.mubr.bf16.gmra.mrb[20].mxu0 %v5704_v43  ;;  %3005 = vmatmul.mubr.bf16.gmra.mrb[20].mxu1 %v5704_v43 }
 0x1ce   : > { %2562 = vmatprep.mubr.bf16.mxu0 %v6058_v17  ;;  %3014 = vmatprep.mubr.bf16.mxu1 %v6058_v17 }
 0x1cf   : > { %3548 = vmatpush1.bf16.msra.mxu0 %v5737_v44 }
 0x1d0   : > { %3549 = vmatprep.subr.bf16.mxu0 %v5742_v45  ;;  %v5760_v45 = vld [vmem:[#allocation7 + $0x114] ss:$8 sps:$4 sm:$0xff]  }
 0x1d3   : > { %3550 = vmatpush1.bf16.msra.mxu0 %v5740_v46 }
 0x1d4   : > { %3551 = vmatprep.subr.bf16.mxu0 %v5745_v47 }
 0x1d5   : > { %2563 = vmatmul.mubr.bf16.gmra.mrb[24].mxu0 %v5705_v48  ;;  %3015 = vmatmul.mubr.bf16.gmra.mrb[24].mxu1 %v5705_v48 }
 0x1d6   : > { %2572 = vmatprep.mubr.bf16.mxu0 %v6058_v17  ;;  %3024 = vmatprep.mubr.bf16.mxu1 %v6058_v17 }
 0x1d7   : > { %3552 = vmatpush1.bf16.msra.mxu0 %v5743_v49 }
 0x1d8   : > { %3553 = vmatprep.subr.bf16.mxu0 %v5748_v50  ;;  %v5808_v50 = vld [vmem:[#allocation8 + $0x10] sm:$0xff]  }
 0x1d9   : > { %4763 = vmatpush3.bf16.msra.mxu1 %v5808_v50 }
 0x1db   : > { %3554 = vmatpush1.bf16.msra.mxu0 %v5746_v51 }
 0x1dc   : > { %3555 = vmatprep.subr.bf16.mxu0 %v5751_v53 }
 0x1dd   : > { %2573 = vmatmul.mubr.bf16.gmra.mrb[28].mxu0 %v5706_v52  ;;  %3025 = vmatmul.mubr.bf16.gmra.mrb[28].mxu1 %v5706_v52 }
 0x1df   : > { %3556 = vmatpush1.bf16.msra.mxu0 %v5749_v54 }
 0x1e0   : > { %3557 = vmatprep.subr.bf16.mxu0 %v5754_v55  ;;  %v5809_v55 = vld [vmem:[#allocation8 + $0x58] sm:$0xff]  }
 0x1e1   : > { %4764 = vmatprep.subr.bf16.mxu1 %v5809_v55 }
 0x1e3   : > { %3558 = vmatpush1.bf16.msra.mxu0 %v5752_v56 }
 0x1e4   : > { %3640 = vmatprep.subr.bf16.mxu0 %v5757_v57 }
 0x278   : > { %v2504_v5 = vpop.f32.mrb[0].mxu0  ;;  %v2956_v6 = vpop.f32.mrb[0].mxu1 }
 0x279   : > { %v4870_v7 = vadd.f32 %v2504_v5, %v6427_v1  ;;  %v4902_v8 = vadd.f32 %v2956_v6, %v6429_v2  ;;  %v2506_v9 = vpop.f32.mrb[1].mxu0  ;;  %v2958_v10 = vpop.f32.mrb[1].mxu1  ;;  %v5763_v6 = vld [vmem:[#allocation7 + $0x124] ss:$8 sps:$4 sm:$0xff]  }
 0x27a   : > { %v4871_v11 = vadd.f32 %v2506_v9, %v6433_v3  ;;  %v4903_v12 = vadd.f32 %v2958_v10, %v6435_v4  ;;  %v2508_v13 = vpop.f32.mrb[2].mxu0  ;;  %v2960_v14 = vpop.f32.mrb[2].mxu1 }
 0x27b   : > { %v4872_v15 = vadd.f32 %v2508_v13, %v6427_v1  ;;  %v4904_v16 = vadd.f32 %v2960_v14, %v6429_v2  ;;  %v2510_v17 = vpop.f32.mrb[3].mxu0  ;;  %v2962_v18 = vpop.f32.mrb[3].mxu1  ;;  %v3035_v24 = vmax.f32 %v4870_v7, 0.0  ;;  %v3037_v25 = vmax.f32 %v4902_v8, 0.0  ;;  %v5811_v14 = vld [vmem:[#allocation8 + $0x60] sm:$0xff]  }
 0x27c   : > { %v4873_v21 = vadd.f32 %v2510_v17, %v6433_v3  ;;  %v4905_v22 = vadd.f32 %v2962_v18, %v6435_v4  ;;  %v3036_v28 = vmax.f32 %v4871_v11, 0.0  ;;  %v3038_v29 = vmax.f32 %v4903_v12, 0.0  ;;  %v5810_v11 = vld [vmem:[#allocation8 + $0x18] sm:$0xff]  }
 0x27d   : > { %v3039_v26 = vmax.f32 %v4872_v15, 0.0  ;;  %v3041_v27 = vmax.f32 %v4904_v16, 0.0  ;;  %4765 = vmatpush3.bf16.msra.mxu1 %v5810_v11 }
 0x27e   : > { %v3040_v30 = vmax.f32 %v4873_v21, 0.0  ;;  %v3042_v31 = vmax.f32 %v4905_v22, 0.0  ;;  %4766 = vmatprep.subr.bf16.mxu1 %v5811_v14 }
 0x27f   : > { %v3099_v33 = vpack.c.bf16 %v3039_v26, %v3035_v24  ;;  %v6445_v34 = vpack.c.bf16 %v3041_v27, %v3037_v25  ;;  %v5766_v24 = vld [vmem:[#allocation7 + $0x134] ss:$8 sps:$4 sm:$0xff]  }
 0x280   : > { %v3100_v36 = vpack.c.bf16 %v3040_v30, %v3036_v28  ;;  %v6447_v37 = vpack.c.bf16 %v3042_v31, %v3038_v29  ;;  %v2514_v38 = vpop.f32.mrb[4].mxu0  ;;  %v2966_v39 = vpop.f32.mrb[4].mxu1  ;;  %v5812_v29 = vld [vmem:[#allocation8 + $0x20] sm:$0xff]  }
 0x281   : > { %v4874_v41 = vadd.f32 %v2514_v38, %v6427_v1  ;;  %v4906_v42 = vadd.f32 %v2966_v39, %v6429_v2  ;;  %v2516_v43 = vpop.f32.mrb[5].mxu0  ;;  %v2968_v44 = vpop.f32.mrb[5].mxu1  ;;  %v5764_v39 = vld [vmem:[#allocation7 + $0x130] ss:$8 sps:$4 sm:$0xff]   ;;  %4767 = vmatpush3.bf16.msra.mxu1 %v5812_v29 }
 0x282   : > { %v4875_v46 = vadd.f32 %v2516_v43, %v6433_v3  ;;  %v4907_v47 = vadd.f32 %v2968_v44, %v6435_v4  ;;  %v2518_v48 = vpop.f32.mrb[6].mxu0  ;;  %v2970_v49 = vpop.f32.mrb[6].mxu1  ;;  %3559 = vmatprep.mubr.bf16.mxu0 %v3100_v36  ;;  %v5769_v44 = vld [vmem:[#allocation7 + $0x144] ss:$8 sps:$4 sm:$0xff]   ;;  %4768 = vmatprep.subr.bf16.mxu1 %v5813_v35 }
 0x283   : > { %v4876_v51 = vadd.f32 %v2518_v48, %v6427_v1  ;;  %v4908_v52 = vadd.f32 %v2970_v49, %v6429_v2  ;;  %v2520_v53 = vpop.f32.mrb[7].mxu0  ;;  %v2972_v54 = vpop.f32.mrb[7].mxu1  ;;  %3560 = vmatmul.mubr.bf16.vlgmr.msra.gmra.mrb[32].mxu0 %v3099_v33  ;;  %v3043_v61 = vmax.f32 %v4874_v41, 0.0  ;;  %v3045_v62 = vmax.f32 %v4906_v42, 0.0  ;;  %v5814_v49 = vld [vmem:[#allocation8 + $0x28] sm:$0xff]  }
 0x284   : > { %v4877_v56 = vadd.f32 %v2520_v53, %v6433_v3  ;;  %v4909_v57 = vadd.f32 %v2972_v54, %v6435_v4  ;;  %3641 = vmatpush1.bf16.msra.mxu0 %v5755_v40  ;;  %v3044_v7 = vmax.f32 %v4875_v46, 0.0  ;;  %v3046_v8 = vmax.f32 %v4907_v47, 0.0 }
 0x285   : > { %v3047_v0 = vmax.f32 %v4876_v51, 0.0  ;;  %v3049_v5 = vmax.f32 %v4908_v52, 0.0  ;;  %3642 = vmatprep.subr.bf16.mxu0 %v5760_v45  ;;  %v5815_v52 = vld [vmem:[#allocation8 + $0x70] sm:$0xff]   ;;  %4769 = vmatpush3.bf16.msra.mxu1 %v5814_v49 }
 0x286   : > { %v3048_v9 = vmax.f32 %v4877_v56, 0.0  ;;  %v3050_v10 = vmax.f32 %v4909_v57, 0.0  ;;  %v5767_v57 = vld [vmem:[#allocation7 + $0x140] ss:$8 sps:$4 sm:$0xff]   ;;  %4770 = vmatprep.subr.bf16.mxu1 %v5815_v52 }
 0x287   : > { %v3103_v12 = vpack.c.bf16 %v3047_v0, %v3043_v61  ;;  %v6457_v13 = vpack.c.bf16 %v3049_v5, %v3045_v62  ;;  %v5772_v5 = vld [vmem:[#allocation7 + $0x154] ss:$8 sps:$4 sm:$0xff]  }
 0x288   : > { %v3104_v15 = vpack.c.bf16 %v3048_v9, %v3044_v7  ;;  %v6459_v16 = vpack.c.bf16 %v3050_v10, %v3046_v8  ;;  %v2524_v17 = vpop.f32.mrb[8].mxu0  ;;  %v2976_v18 = vpop.f32.mrb[8].mxu1  ;;  %3643 = vmatpush1.bf16.msra.mxu0 %v5758_v58  ;;  %v5816_v10 = vld [vmem:[#allocation8 + $0x30] sm:$0xff]  }
 0x289   : > { %v4878_v20 = vadd.f32 %v2524_v17, %v6427_v1  ;;  %v4910_v21 = vadd.f32 %v2976_v18, %v6429_v2  ;;  %v2526_v22 = vpop.f32.mrb[9].mxu0  ;;  %v2978_v23 = vpop.f32.mrb[9].mxu1  ;;  %3644 = vmatprep.subr.bf16.mxu0 %v5763_v6  ;;  %4771 = vmatpush3.bf16.msra.mxu1 %v5816_v10 }
 0x28a   : > { %v4879_v25 = vadd.f32 %v2526_v22, %v6433_v3  ;;  %v4911_v26 = vadd.f32 %v2978_v23, %v6435_v4  ;;  %v2528_v27 = vpop.f32.mrb[10].mxu0  ;;  %v2980_v28 = vpop.f32.mrb[10].mxu1  ;;  %3569 = vmatprep.mubr.bf16.mxu0 %v3104_v15 }
 0x28b   : > { %v4880_v30 = vadd.f32 %v2528_v27, %v6427_v1  ;;  %v4912_v31 = vadd.f32 %v2980_v28, %v6429_v2  ;;  %v2530_v32 = vpop.f32.mrb[11].mxu0  ;;  %v2982_v33 = vpop.f32.mrb[11].mxu1  ;;  %3570 = vmatmul.mubr.bf16.gmra.mrb[36].mxu0 %v3103_v12  ;;  %v3051_v40 = vmax.f32 %v4878_v20, 0.0  ;;  %v3053_v41 = vmax.f32 %v4910_v21, 0.0 }
 0x28c   : > { %v4881_v36 = vadd.f32 %v2530_v32, %v6433_v3  ;;  %v4913_v38 = vadd.f32 %v2982_v33, %v6435_v4  ;;  %3645 = vmatpush1.bf16.msra.mxu0 %v5761_v19  ;;  %v3052_v45 = vmax.f32 %v4879_v25, 0.0  ;;  %v3054_v46 = vmax.f32 %v4911_v26, 0.0  ;;  %v5770_v19 = vld [vmem:[#allocation7 + $0x150] ss:$8 sps:$4 sm:$0xff]  }
 0x28d   : > { %v3055_v42 = vmax.f32 %v4880_v30, 0.0  ;;  %v3057_v43 = vmax.f32 %v4912_v31, 0.0  ;;  %3646 = vmatprep.subr.bf16.mxu0 %v5766_v24  ;;  %v5775_v24 = vld [vmem:[#allocation7 + $0x164] ss:$8 sps:$4 sm:$0xff]  }
 0x28e   : > { %v3056_v47 = vmax.f32 %v4881_v36, 0.0  ;;  %v3058_v48 = vmax.f32 %v4913_v38, 0.0  ;;  %v5773_v36 = vld [vmem:[#allocation7 + $0x160] ss:$8 sps:$4 sm:$0xff]  }
 0x28f   : > { %v3107_v50 = vpack.c.bf16 %v3055_v42, %v3051_v40  ;;  %v6469_v51 = vpack.c.bf16 %v3057_v43, %v3053_v41  ;;  %v5778_v42 = vld [vmem:[#allocation7 + $0x174] ss:$8 sps:$4 sm:$0xff]  }
 0x290   : > { %v3108_v53 = vpack.c.bf16 %v3056_v47, %v3052_v45  ;;  %v6471_v54 = vpack.c.bf16 %v3058_v48, %v3054_v46  ;;  %v2534_v55 = vpop.f32.mrb[12].mxu0  ;;  %v2986_v56 = vpop.f32.mrb[12].mxu1  ;;  %3647 = vmatpush1.bf16.msra.mxu0 %v5764_v39 }
 0x291   : > { %v4882_v58 = vadd.f32 %v2534_v55, %v6427_v1  ;;  %v4914_v61 = vadd.f32 %v2986_v56, %v6429_v2  ;;  %v2536_v62 = vpop.f32.mrb[13].mxu0  ;;  %v2988_v0 = vpop.f32.mrb[13].mxu1  ;;  %3648 = vmatprep.subr.bf16.mxu0 %v5769_v44  ;;  %v5776_v55 = vld [vmem:[#allocation7 + $0x170] ss:$8 sps:$4 sm:$0xff]  }
 0x292   : > { %v4883_v6 = vadd.f32 %v2536_v62, %v6433_v3  ;;  %v4915_v7 = vadd.f32 %v2988_v0, %v6435_v4  ;;  %v2538_v8 = vpop.f32.mrb[14].mxu0  ;;  %v2990_v9 = vpop.f32.mrb[14].mxu1  ;;  %3579 = vmatprep.mubr.bf16.mxu0 %v3108_v53  ;;  %v5781_v62 = vld [vmem:[#allocation7 + $0x184] ss:$8 sps:$4 sm:$0xff]  }
 0x293   : > { %v4884_v11 = vadd.f32 %v2538_v8, %v6427_v1  ;;  %v4916_v12 = vadd.f32 %v2990_v9, %v6429_v2  ;;  %v2540_v14 = vpop.f32.mrb[15].mxu0  ;;  %v2992_v15 = vpop.f32.mrb[15].mxu1  ;;  %3580 = vmatmul.mubr.bf16.gmra.mrb[40].mxu0 %v3107_v50  ;;  %v3059_v20 = vmax.f32 %v4882_v58, 0.0  ;;  %v3061_v21 = vmax.f32 %v4914_v61, 0.0 }
 0x294   : > { %v4885_v17 = vadd.f32 %v2540_v14, %v6433_v3  ;;  %v4917_v18 = vadd.f32 %v2992_v15, %v6435_v4  ;;  %3649 = vmatpush1.bf16.msra.mxu0 %v5767_v57  ;;  %v3060_v25 = vmax.f32 %v4883_v6, 0.0  ;;  %v3062_v26 = vmax.f32 %v4915_v7, 0.0  ;;  %v5779_v15 = vld [vmem:[#allocation7 + $0x180] ss:$8 sps:$4 sm:$0xff]  }
 0x295   : > { %v3063_v22 = vmax.f32 %v4884_v11, 0.0  ;;  %v3065_v23 = vmax.f32 %v4916_v12, 0.0  ;;  %3650 = vmatprep.subr.bf16.mxu0 %v5772_v5 }
 0x296   : > { %v3064_v27 = vmax.f32 %v4885_v17, 0.0  ;;  %v3066_v28 = vmax.f32 %v4917_v18, 0.0 }
 0x297   : > { %v3111_v29 = vpack.c.bf16 %v3063_v22, %v3059_v20  ;;  %v6481_v30 = vpack.c.bf16 %v3065_v23, %v3061_v21  ;;  %v5784_v21 = vld [vmem:[#allocation7 + $0x194] ss:$8 sps:$4 sm:$0xff]  }
 0x298   : > { %v3112_v31 = vpack.c.bf16 %v3064_v27, %v3060_v25  ;;  %v6483_v32 = vpack.c.bf16 %v3066_v28, %v3062_v26  ;;  %v2544_v33 = vpop.f32.mrb[16].mxu0  ;;  %v2996_v35 = vpop.f32.mrb[16].mxu1  ;;  %3651 = vmatpush1.bf16.msra.mxu0 %v5770_v19 }
 0x299   : > { %v4886_v38 = vadd.f32 %v2544_v33, %v6427_v1  ;;  %v4918_v39 = vadd.f32 %v2996_v35, %v6429_v2  ;;  %v2546_v40 = vpop.f32.mrb[17].mxu0  ;;  %v2998_v41 = vpop.f32.mrb[17].mxu1  ;;  %3652 = vmatprep.subr.bf16.mxu0 %v5775_v24  ;;  %v5782_v35 = vld [vmem:[#allocation7 + $0x190] ss:$8 sps:$4 sm:$0xff]  }
 0x29a   : > { %v4887_v43 = vadd.f32 %v2546_v40, %v6433_v3  ;;  %v4919_v44 = vadd.f32 %v2998_v41, %v6435_v4  ;;  %v2548_v45 = vpop.f32.mrb[18].mxu0  ;;  %v3000_v46 = vpop.f32.mrb[18].mxu1  ;;  %3589 = vmatprep.mubr.bf16.mxu0 %v3112_v31  ;;  %v5787_v41 = vld [vmem:[#allocation7 + $0x1a4] ss:$8 sps:$4 sm:$0xff]  }
 0x29b   : > { %v4888_v47 = vadd.f32 %v2548_v45, %v6427_v1  ;;  %v4920_v48 = vadd.f32 %v3000_v46, %v6429_v2  ;;  %v2550_v49 = vpop.f32.mrb[19].mxu0  ;;  %v3002_v50 = vpop.f32.mrb[19].mxu1  ;;  %3590 = vmatmul.mubr.bf16.gmra.mrb[44].mxu0 %v3111_v29  ;;  %v3067_v56 = vmax.f32 %v4886_v38, 0.0  ;;  %v3069_v57 = vmax.f32 %v4918_v39, 0.0 }
 0x29c   : > { %v4889_v52 = vadd.f32 %v2550_v49, %v6433_v3  ;;  %v4921_v53 = vadd.f32 %v3002_v50, %v6435_v4  ;;  %3653 = vmatpush1.bf16.msra.mxu0 %v5773_v36  ;;  %v3068_v0 = vmax.f32 %v4887_v43, 0.0  ;;  %v3070_v5 = vmax.f32 %v4919_v44, 0.0 }
 0x29d   : > { %v3071_v58 = vmax.f32 %v4888_v47, 0.0  ;;  %v3073_v61 = vmax.f32 %v4920_v48, 0.0  ;;  %3654 = vmatprep.subr.bf16.mxu0 %v5778_v42 }
 0x29e   : > { %v3072_v6 = vmax.f32 %v4889_v52, 0.0  ;;  %v3074_v7 = vmax.f32 %v4921_v53, 0.0  ;;  %v5785_v53 = vld [vmem:[#allocation7 + $0x1a0] ss:$8 sps:$4 sm:$0xff]  }
 0x29f   : > { %v3115_v8 = vpack.c.bf16 %v3071_v58, %v3067_v56  ;;  %v6493_v9 = vpack.c.bf16 %v3073_v61, %v3069_v57  ;;  %v5790_v61 = vld [vmem:[#allocation7 + $0x1b4] ss:$8 sps:$4 sm:$0xff]  }
 0x2a0   : > { %v3116_v10 = vpack.c.bf16 %v3072_v6, %v3068_v0  ;;  %v6495_v11 = vpack.c.bf16 %v3074_v7, %v3070_v5  ;;  %v2554_v12 = vpop.f32.mrb[20].mxu0  ;;  %v3006_v14 = vpop.f32.mrb[20].mxu1  ;;  %3655 = vmatpush1.bf16.msra.mxu0 %v5776_v55 }
 0x2a1   : > { %v4890_v17 = vadd.f32 %v2554_v12, %v6427_v1  ;;  %v4922_v18 = vadd.f32 %v3006_v14, %v6429_v2  ;;  %v2556_v19 = vpop.f32.mrb[21].mxu0  ;;  %v3008_v20 = vpop.f32.mrb[21].mxu1  ;;  %3656 = vmatprep.subr.bf16.mxu0 %v5781_v62 }
 0x2a2   : > { %v4891_v22 = vadd.f32 %v2556_v19, %v6433_v3  ;;  %v4923_v23 = vadd.f32 %v3008_v20, %v6435_v4  ;;  %v2558_v24 = vpop.f32.mrb[22].mxu0  ;;  %v3010_v25 = vpop.f32.mrb[22].mxu1  ;;  %3599 = vmatprep.mubr.bf16.mxu0 %v3116_v10 }
 0x2a3   : > { %v4892_v26 = vadd.f32 %v2558_v24, %v6427_v1  ;;  %v4924_v27 = vadd.f32 %v3010_v25, %v6429_v2  ;;  %v2560_v28 = vpop.f32.mrb[23].mxu0  ;;  %v3012_v29 = vpop.f32.mrb[23].mxu1  ;;  %3600 = vmatmul.mubr.bf16.gmra.mrb[48].mxu0 %v3115_v8  ;;  %v3075_v36 = vmax.f32 %v4890_v17, 0.0  ;;  %v3077_v38 = vmax.f32 %v4922_v18, 0.0  ;;  %v5788_v17 = vld [vmem:[#allocation7 + $0x1b0] ss:$8 sps:$4 sm:$0xff]  }
 0x2a4   : > { %v4893_v31 = vadd.f32 %v2560_v28, %v6433_v3  ;;  %v4925_v33 = vadd.f32 %v3012_v29, %v6435_v4  ;;  %3657 = vmatpush1.bf16.msra.mxu0 %v5779_v15  ;;  %v3076_v42 = vmax.f32 %v4891_v22, 0.0  ;;  %v3078_v43 = vmax.f32 %v4923_v23, 0.0  ;;  %v5793_v22 = vld [vmem:[#allocation7 + $0x1c4] ss:$8 sps:$4 sm:$0xff]  }
 0x2a5   : > { %v3079_v39 = vmax.f32 %v4892_v26, 0.0  ;;  %v3081_v40 = vmax.f32 %v4924_v27, 0.0  ;;  %3658 = vmatprep.subr.bf16.mxu0 %v5784_v21 }
 0x2a6   : > { %v3080_v44 = vmax.f32 %v4893_v31, 0.0  ;;  %v3082_v45 = vmax.f32 %v4925_v33, 0.0 }
 0x2a7   : > { %v3119_v46 = vpack.c.bf16 %v3079_v39, %v3075_v36  ;;  %v6505_v47 = vpack.c.bf16 %v3081_v40, %v3077_v38  ;;  %v5791_v36 = vld [vmem:[#allocation7 + $0x1c0] ss:$8 sps:$4 sm:$0xff]  }
 0x2a8   : > { %v3120_v48 = vpack.c.bf16 %v3080_v44, %v3076_v42  ;;  %v6507_v49 = vpack.c.bf16 %v3082_v45, %v3078_v43  ;;  %v2564_v50 = vpop.f32.mrb[24].mxu0  ;;  %v3016_v52 = vpop.f32.mrb[24].mxu1  ;;  %3659 = vmatpush1.bf16.msra.mxu0 %v5782_v35  ;;  %v5796_v42 = vld [vmem:[#allocation7 + $0x1d4] ss:$8 sps:$4 sm:$0xff]  }
 0x2a9   : > { %v4894_v55 = vadd.f32 %v2564_v50, %v6427_v1  ;;  %v4926_v56 = vadd.f32 %v3016_v52, %v6429_v2  ;;  %v2566_v57 = vpop.f32.mrb[25].mxu0  ;;  %v3018_v58 = vpop.f32.mrb[25].mxu1  ;;  %3660 = vmatprep.subr.bf16.mxu0 %v5787_v41 }
 0x2aa   : > { %v4895_v62 = vadd.f32 %v2566_v57, %v6433_v3  ;;  %v4927_v0 = vadd.f32 %v3018_v58, %v6435_v4  ;;  %v2568_v5 = vpop.f32.mrb[26].mxu0  ;;  %v3020_v6 = vpop.f32.mrb[26].mxu1  ;;  %3609 = vmatprep.mubr.bf16.mxu0 %v3120_v48  ;;  %v5794_v57 = vld [vmem:[#allocation7 + $0x1d0] ss:$8 sps:$4 sm:$0xff]  }
 0x2ab   : > { %v4896_v7 = vadd.f32 %v2568_v5, %v6427_v1  ;;  %v4928_v8 = vadd.f32 %v3020_v6, %v6429_v2  ;;  %v2570_v10 = vpop.f32.mrb[27].mxu0  ;;  %v3022_v12 = vpop.f32.mrb[27].mxu1  ;;  %3610 = vmatmul.mubr.bf16.gmra.mrb[52].mxu0 %v3119_v46  ;;  %v3083_v18 = vmax.f32 %v4894_v55, 0.0  ;;  %v3085_v19 = vmax.f32 %v4926_v56, 0.0  ;;  %v5799_v5 = vld [vmem:[#allocation7 + $0x1e4] ss:$8 sps:$4 sm:$0xff]  }
 0x2ac   : > { %v4897_v14 = vadd.f32 %v2570_v10, %v6433_v3  ;;  %v4929_v15 = vadd.f32 %v3022_v12, %v6435_v4  ;;  %3661 = vmatpush1.bf16.msra.mxu0 %v5785_v53  ;;  %v3084_v23 = vmax.f32 %v4895_v62, 0.0  ;;  %v3086_v24 = vmax.f32 %v4927_v0, 0.0 }
 0x2ad   : > { %v3087_v20 = vmax.f32 %v4896_v7, 0.0  ;;  %v3089_v21 = vmax.f32 %v4928_v8, 0.0  ;;  %3662 = vmatprep.subr.bf16.mxu0 %v5790_v61 }
 0x2ae   : > { %v3088_v25 = vmax.f32 %v4897_v14, 0.0  ;;  %v3090_v26 = vmax.f32 %v4929_v15, 0.0  ;;  %v5800_v15 = vld [vmem:[#allocation7 + $0x1f0] ss:$8 sps:$4 sm:$0xff]  }
 0x2af   : > { %v3123_v27 = vpack.c.bf16 %v3087_v20, %v3083_v18  ;;  %v6517_v28 = vpack.c.bf16 %v3089_v21, %v3085_v19 }
 0x2b0   : > { %v3124_v29 = vpack.c.bf16 %v3088_v25, %v3084_v23  ;;  %v3126_v31 = vpack.c.bf16 %v3090_v26, %v3086_v24  ;;  %v2574_v33 = vpop.f32.mrb[28].mxu0  ;;  %v3026_v35 = vpop.f32.mrb[28].mxu1  ;;  %3663 = vmatpush1.bf16.msra.mxu0 %v5788_v17  ;;  %v5820_v25 = vld [vmem:[#allocation10 + $0x8] sm:$0xff]  }
 0x2b1   : > { %v4898_v38 = vadd.f32 %v2574_v33, %v6427_v1  ;;  %v4930_v39 = vadd.f32 %v3026_v35, %v6429_v2  ;;  %v2576_v40 = vpop.f32.mrb[29].mxu0  ;;  %v3028_v41 = vpop.f32.mrb[29].mxu1  ;;  %3664 = vmatprep.subr.bf16.mxu0 %v5793_v22 }
 0x2b2   : > { %v4899_v43 = vadd.f32 %v2576_v40, %v6433_v3  ;;  %v4931_v44 = vadd.f32 %v3028_v41, %v6435_v4  ;;  %v2578_v45 = vpop.f32.mrb[30].mxu0  ;;  %v3030_v46 = vpop.f32.mrb[30].mxu1  ;;  %3619 = vmatprep.mubr.bf16.mxu0 %v3124_v29 }
 0x2b3   : > { %v4900_v48 = vadd.f32 %v2578_v45, %v6427_v1  ;;  %v4932_v50 = vadd.f32 %v3030_v46, %v6429_v2  ;;  %v2580_v52 = vpop.f32.mrb[31].mxu0  ;;  %v3032_v53 = vpop.f32.mrb[31].mxu1  ;;  %3620 = vmatmul.mubr.bf16.gmra.mrb[56].mxu0 %v3123_v27  ;;  %v3091_v58 = vmax.f32 %v4898_v38, 0.0  ;;  %v3093_v61 = vmax.f32 %v4930_v39, 0.0 }
 0x2b4   : > { %v4901_v55 = vadd.f32 %v2580_v52, %v6433_v3  ;;  %v4933_v56 = vadd.f32 %v3032_v53, %v6435_v4  ;;  %3665 = vmatpush1.bf16.msra.mxu0 %v5791_v36  ;;  %v3092_v6 = vmax.f32 %v4899_v43, 0.0  ;;  %v3094_v7 = vmax.f32 %v4931_v44, 0.0  ;;  %v5797_v3 = vld [vmem:[#allocation7 + $0x1e0] ss:$8 sps:$4 sm:$0xff]   ;;  %v5802_v4 = vld [vmem:[#allocation7 + $0x1f4] ss:$8 sps:$4 sm:$0xff]  }
 0x2b5   : > { %v3095_v62 = vmax.f32 %v4900_v48, 0.0  ;;  %v3097_v0 = vmax.f32 %v4932_v50, 0.0  ;;  %3666 = vmatprep.subr.bf16.mxu0 %v5796_v42  ;;  %v5821_v36 = vld [vmem:[#allocation10 + $0x10] sm:$0xff]  }
 0x2b6   : > { %v3096_v1 = vmax.f32 %v4901_v55, 0.0  ;;  %v3098_v8 = vmax.f32 %v4933_v56, 0.0 }
 0x2b7   : > { %v3127_v2 = vpack.c.bf16 %v3095_v62, %v3091_v58  ;;  %v3129_v10 = vpack.c.bf16 %v3097_v0, %v3093_v61 }
 0x2b8   : > { %v3128_v12 = vpack.c.bf16 %v3096_v1, %v3092_v6  ;;  %v3130_v14 = vpack.c.bf16 %v3098_v8, %v3094_v7  ;;  %3667 = vmatpush1.bf16.msra.mxu0 %v5794_v57 }
 0x2b9   : > { %3668 = vmatprep.subr.bf16.mxu0 %v5799_v5 }
 0x2ba   : > { %3629 = vmatprep.mubr.bf16.mxu0 %v3128_v12 }
 0x2bb   : > { %3630 = vmatmul.mubr.bf16.gmra.mrb[60].mxu0 %v3127_v2 }
 0x2bc   : > { %3669 = vmatpush1.bf16.msra.mxu0 %v5797_v3  ;;  %3672 = vmatprep.mubr.bf16.mxu0 %v6447_v37  ;;  %v5818_v37 = vld [vmem:[#allocation8 + $0x38] sm:$0xff]  }
 0x2bd   : > { %3670 = vmatprep.subr.bf16.mxu0 %v5802_v4 }
 0x2c0   : > { %3671 = vmatpush1.bf16.msra.mxu0 %v5800_v15 }
 0x2c3   : > { %3673 = vmatmul.mubr.bf16.vlgmr.msra.gmra.mrb[32].mxu0 %v6445_v34  ;;  %v5817_v34 = vld [vmem:[#allocation8 + $0x78] sm:$0xff]  }
 0x2c4   : > { %3682 = vmatprep.mubr.bf16.mxu0 %v6459_v16  ;;  %4772 = vmatprep.subr.bf16.mxu1 %v5817_v34  ;;  %v3195_v16 = vld [vmem:[%s6681_s4] sm:$0x3] }
 0x2c5   : > { %4773 = vmatpush3.bf16.msra.mxu1 %v5818_v37 }
 0x2cb   : > { %3683 = vmatmul.mubr.bf16.gmra.mrb[36].mxu0 %v6457_v13  ;;  %v5819_v13 = vld [vmem:[#allocation10] sm:$0xff]  }
 0x2cc   : > { %3692 = vmatprep.mubr.bf16.mxu0 %v6471_v54  ;;  %4838 = vmatprep.subr.bf16.mxu1 %v5819_v13  ;;  %v6549_v54 = vrot.slane %v3195_v16, %v709_v63 }
 0x2d3   : > { %3693 = vmatmul.mubr.bf16.gmra.mrb[40].mxu0 %v6469_v51  ;;  %v6545_v51 = vrot.slane %v3195_v16, %v705_v60 }
 0x2d4   : > { %3702 = vmatprep.mubr.bf16.mxu0 %v6483_v32 }
 0x2db   : > { %3703 = vmatmul.mubr.bf16.gmra.mrb[44].mxu0 %v6481_v30 }
 0x2dc   : > { %3712 = vmatprep.mubr.bf16.mxu0 %v6495_v11 }
 0x2e3   : > { %3713 = vmatmul.mubr.bf16.gmra.mrb[48].mxu0 %v6493_v9 }
 0x2e4   : > { %3722 = vmatprep.mubr.bf16.mxu0 %v6507_v49 }
 0x2eb   : > { %3723 = vmatmul.mubr.bf16.gmra.mrb[52].mxu0 %v6505_v47 }
 0x2ec   : > { %3732 = vmatprep.mubr.bf16.mxu0 %v3126_v31 }
 0x2f3   : > { %3733 = vmatmul.mubr.bf16.gmra.mrb[56].mxu0 %v6517_v28 }
 0x2f4   : > { %3742 = vmatprep.mubr.bf16.mxu0 %v3130_v14 }
 0x2fb   : > { %3743 = vmatmul.mubr.bf16.gmra.mrb[60].mxu0 %v3129_v10 }
 0x396   : > { %v3674_v30 = vpop.f32.mrb[32].mxu0 }
 0x397   : > { %v4934_v32 = vadd.f32 %v3674_v30, %v6545_v51  ;;  %v3676_v9 = vpop.f32.mrb[33].mxu0 }
 0x398   : > { %v4935_v11 = vadd.f32 %v3676_v9, %v6549_v54  ;;  %v3678_v47 = vpop.f32.mrb[34].mxu0 }
 0x399   : > { %v4936_v49 = vadd.f32 %v3678_v47, %v6545_v51  ;;  %v3680_v17 = vpop.f32.mrb[35].mxu0  ;;  %v3753_v19 = vmax.f32 %v4934_v32, 0.0 }
 0x39a   : > { %v4937_v18 = vadd.f32 %v3680_v17, %v6549_v54  ;;  %v3754_v60 = vmax.f32 %v4935_v11, 0.0 }
 0x39b   : > { %v3755_v20 = vmax.f32 %v4936_v49, 0.0 }
 0x39c   : > { %v3756_v21 = vmax.f32 %v4937_v18, 0.0 }
 0x39d   : > { %v3785_v22 = vpack.c.bf16 %v3755_v20, %v3753_v19 }
 0x39e   : > { %v3786_v59 = vpack.c.bf16 %v3756_v21, %v3754_v60  ;;  %v3684_v63 = vpop.f32.mrb[36].mxu0 }
 0x39f   : > { %v4938_v23 = vadd.f32 %v3684_v63, %v6545_v51  ;;  %v3686_v24 = vpop.f32.mrb[37].mxu0 }
 0x3a0   : > { %v4939_v26 = vadd.f32 %v3686_v24, %v6549_v54  ;;  %v3688_v27 = vpop.f32.mrb[38].mxu0  ;;  %3968 = vmatprep.mubr.bf16.mxu1 %v3786_v59 }
 0x3a1   : > { %v4940_v28 = vadd.f32 %v3688_v27, %v6545_v51  ;;  %v3690_v29 = vpop.f32.mrb[39].mxu0  ;;  %3969 = vmatmul.mubr.bf16.vlgmr.msra.gmra.mrb[32].mxu1 %v3785_v22  ;;  %v3757_v33 = vmax.f32 %v4938_v23, 0.0 }
 0x3a2   : > { %v4941_v31 = vadd.f32 %v3690_v29, %v6549_v54  ;;  %4839 = vmatpush3.bf16.msra.mxu1 %v5819_v13  ;;  %v3758_v38 = vmax.f32 %v4939_v26, 0.0 }
 0x3a3   : > { %v3759_v35 = vmax.f32 %v4940_v28, 0.0  ;;  %4840 = vmatprep.subr.bf16.mxu1 %v5820_v25 }
 0x3a4   : > { %v3760_v39 = vmax.f32 %v4941_v31, 0.0 }
 0x3a5   : > { %v3787_v40 = vpack.c.bf16 %v3759_v35, %v3757_v33 }
 0x3a6   : > { %v3788_v41 = vpack.c.bf16 %v3760_v39, %v3758_v38  ;;  %v3694_v42 = vpop.f32.mrb[40].mxu0  ;;  %4841 = vmatpush3.bf16.msra.mxu1 %v5820_v25 }
 0x3a7   : > { %v4942_v43 = vadd.f32 %v3694_v42, %v6545_v51  ;;  %v3696_v44 = vpop.f32.mrb[41].mxu0  ;;  %4842 = vmatprep.subr.bf16.mxu1 %v5821_v36 }
 0x3a8   : > { %v4943_v45 = vadd.f32 %v3696_v44, %v6549_v54  ;;  %v3698_v46 = vpop.f32.mrb[42].mxu0  ;;  %3976 = vmatprep.mubr.bf16.mxu1 %v3788_v41 }
 0x3a9   : > { %v4944_v48 = vadd.f32 %v3698_v46, %v6545_v51  ;;  %v3700_v50 = vpop.f32.mrb[43].mxu0  ;;  %3977 = vmatmul.mubr.bf16.gmra.mrb[36].mxu1 %v3787_v40  ;;  %v3761_v53 = vmax.f32 %v4942_v43, 0.0 }
 0x3aa   : > { %v4945_v52 = vadd.f32 %v3700_v50, %v6549_v54  ;;  %4843 = vmatpush3.bf16.msra.mxu1 %v5821_v36  ;;  %v3762_v56 = vmax.f32 %v4943_v45, 0.0 }
 0x3ab   : > { %v3763_v55 = vmax.f32 %v4944_v48, 0.0 }
 0x3ac   : > { %v3764_v57 = vmax.f32 %v4945_v52, 0.0 }
 0x3ad   : > { %v3789_v58 = vpack.c.bf16 %v3763_v55, %v3761_v53 }
 0x3ae   : > { %v3790_v61 = vpack.c.bf16 %v3764_v57, %v3762_v56  ;;  %v3704_v62 = vpop.f32.mrb[44].mxu0 }
 0x3af   : > { %v4946_v0 = vadd.f32 %v3704_v62, %v6545_v51  ;;  %v3706_v5 = vpop.f32.mrb[45].mxu0 }
 0x3b0   : > { %v4947_v6 = vadd.f32 %v3706_v5, %v6549_v54  ;;  %v3708_v7 = vpop.f32.mrb[46].mxu0  ;;  %3984 = vmatprep.mubr.bf16.mxu1 %v3790_v61 }
 0x3b1   : > { %v4948_v1 = vadd.f32 %v3708_v7, %v6545_v51  ;;  %v3710_v8 = vpop.f32.mrb[47].mxu0  ;;  %3985 = vmatmul.mubr.bf16.gmra.mrb[40].mxu1 %v3789_v58  ;;  %v3765_v10 = vmax.f32 %v4946_v0, 0.0 }
 0x3b2   : > { %v4949_v2 = vadd.f32 %v3710_v8, %v6549_v54  ;;  %v3766_v14 = vmax.f32 %v4947_v6, 0.0 }
 0x3b3   : > { %v3767_v12 = vmax.f32 %v4948_v1, 0.0 }
 0x3b4   : > { %v3768_v3 = vmax.f32 %v4949_v2, 0.0 }
 0x3b5   : > { %v3791_v4 = vpack.c.bf16 %v3767_v12, %v3765_v10  ;;  %v5822_v10 = vld [vmem:[#allocation10 + $0x18] sm:$0xff]   ;;  %v5823_v12 = vld [vmem:[#allocation10 + $0x20] sm:$0xff]  }
 0x3b6   : > { %v3792_v15 = vpack.c.bf16 %v3768_v3, %v3766_v14  ;;  %v3714_v34 = vpop.f32.mrb[48].mxu0  ;;  %4844 = vmatprep.subr.bf16.mxu1 %v5822_v10  ;;  %v5824_v14 = vld [vmem:[#allocation10 + $0x28] sm:$0xff]  }
 0x3b7   : > { %v4950_v37 = vadd.f32 %v3714_v34, %v6545_v51  ;;  %v3716_v13 = vpop.f32.mrb[49].mxu0  ;;  %4845 = vmatpush3.bf16.msra.mxu1 %v5822_v10 }
 0x3b8   : > { %v4951_v16 = vadd.f32 %v3716_v13, %v6549_v54  ;;  %v3718_v30 = vpop.f32.mrb[50].mxu0  ;;  %3992 = vmatprep.mubr.bf16.mxu1 %v3792_v15  ;;  %4846 = vmatprep.subr.bf16.mxu1 %v5823_v12 }
 0x3b9   : > { %v4952_v32 = vadd.f32 %v3718_v30, %v6545_v51  ;;  %v3720_v9 = vpop.f32.mrb[51].mxu0  ;;  %3993 = vmatmul.mubr.bf16.gmra.mrb[44].mxu1 %v3791_v4  ;;  %v3769_v47 = vmax.f32 %v4950_v37, 0.0  ;;  %v6586_v4 = vld [vmem:[%s6683_s6] ss:$0 sm:$0xff] }
 0x3ba   : > { %v4953_v11 = vadd.f32 %v3720_v9, %v6549_v54  ;;  %v3770_v17 = vmax.f32 %v4951_v16, 0.0 }
 0x3bb   : > { %v3771_v49 = vmax.f32 %v4952_v32, 0.0  ;;  %4847 = vmatpush3.bf16.msra.mxu1 %v5823_v12 }
 0x3bc   : > { %v3772_v18 = vmax.f32 %v4953_v11, 0.0  ;;  %4848 = vmatprep.subr.bf16.mxu1 %v5824_v14 }
 0x3bd   : > { %v3793_v19 = vpack.c.bf16 %v3771_v49, %v3769_v47 }
 0x3be   : > { %v3794_v20 = vpack.c.bf16 %v3772_v18, %v3770_v17  ;;  %v3724_v60 = vpop.f32.mrb[52].mxu0 }
 0x3bf   : > { %v4954_v21 = vadd.f32 %v3724_v60, %v6545_v51  ;;  %v3726_v22 = vpop.f32.mrb[53].mxu0  ;;  %4849 = vmatpush3.bf16.msra.mxu1 %v5824_v14 }
 0x3c0   : > { %v4955_v59 = vadd.f32 %v3726_v22, %v6549_v54  ;;  %v3728_v63 = vpop.f32.mrb[54].mxu0  ;;  %4000 = vmatprep.mubr.bf16.mxu1 %v3794_v20 }
 0x3c1   : > { %v4956_v23 = vadd.f32 %v3728_v63, %v6545_v51  ;;  %v3730_v24 = vpop.f32.mrb[55].mxu0  ;;  %4001 = vmatmul.mubr.bf16.gmra.mrb[48].mxu1 %v3793_v19  ;;  %v3773_v26 = vmax.f32 %v4954_v21, 0.0 }
 0x3c2   : > { %v4957_v25 = vadd.f32 %v3730_v24, %v6549_v54  ;;  %v3774_v28 = vmax.f32 %v4955_v59, 0.0 }
 0x3c3   : > { %v3775_v27 = vmax.f32 %v4956_v23, 0.0 }
 0x3c4   : > { %v3776_v29 = vmax.f32 %v4957_v25, 0.0 }
 0x3c5   : > { %v3795_v31 = vpack.c.bf16 %v3775_v27, %v3773_v26 }
 0x3c6   : > { %v3796_v33 = vpack.c.bf16 %v3776_v29, %v3774_v28  ;;  %v3734_v35 = vpop.f32.mrb[56].mxu0 }
 0x3c7   : > { %v4958_v36 = vadd.f32 %v3734_v35, %v6545_v51  ;;  %v3736_v38 = vpop.f32.mrb[57].mxu0 }
 0x3c8   : > { %v4959_v39 = vadd.f32 %v3736_v38, %v6549_v54  ;;  %v3738_v40 = vpop.f32.mrb[58].mxu0  ;;  %4008 = vmatprep.mubr.bf16.mxu1 %v3796_v33 }
 0x3c9   : > { %v4960_v41 = vadd.f32 %v3738_v40, %v6545_v51  ;;  %v3740_v42 = vpop.f32.mrb[59].mxu0  ;;  %4009 = vmatmul.mubr.bf16.gmra.mrb[52].mxu1 %v3795_v31  ;;  %v3777_v44 = vmax.f32 %v4958_v36, 0.0 }
 0x3ca   : > { %v4961_v43 = vadd.f32 %v3740_v42, %v6549_v54  ;;  %v3778_v46 = vmax.f32 %v4959_v39, 0.0 }
 0x3cb   : > { %v3779_v45 = vmax.f32 %v4960_v41, 0.0 }
 0x3cc   : > { %v3780_v48 = vmax.f32 %v4961_v43, 0.0 }
 0x3cd   : > { %v3797_v50 = vpack.c.bf16 %v3779_v45, %v3777_v44 }
 0x3ce   : > { %v3798_v52 = vpack.c.bf16 %v3780_v48, %v3778_v46  ;;  %v3744_v53 = vpop.f32.mrb[60].mxu0 }
 0x3cf   : > { %v4962_v55 = vadd.f32 %v3744_v53, %v6545_v51  ;;  %v3746_v56 = vpop.f32.mrb[61].mxu0 }
 0x3d0   : > { %v4963_v57 = vadd.f32 %v3746_v56, %v6549_v54  ;;  %v3748_v58 = vpop.f32.mrb[62].mxu0  ;;  %4016 = vmatprep.mubr.bf16.mxu1 %v3798_v52 }
 0x3d1   : > { %v4964_v61 = vadd.f32 %v3748_v58, %v6545_v51  ;;  %v3750_v62 = vpop.f32.mrb[63].mxu0  ;;  %4017 = vmatmul.mubr.bf16.gmra.mrb[56].mxu1 %v3797_v50  ;;  %v3781_v5 = vmax.f32 %v4962_v55, 0.0  ;;  %v5825_v51 = vld [vmem:[#allocation10 + $0x30] sm:$0xff]  }
 0x3d2   : > { %v4965_v0 = vadd.f32 %v3750_v62, %v6549_v54  ;;  %v3782_v7 = vmax.f32 %v4963_v57, 0.0  ;;  %4850 = vmatprep.subr.bf16.mxu1 %v5825_v51  ;;  %v5826_v54 = vld [vmem:[#allocation10 + $0x38] sm:$0xff]  }
 0x3d3   : > { %v3783_v6 = vmax.f32 %v4964_v61, 0.0  ;;  %4851 = vmatpush3.bf16.msra.mxu1 %v5825_v51 }
 0x3d4   : > { %v3784_v1 = vmax.f32 %v4965_v0, 0.0  ;;  %4852 = vmatprep.subr.bf16.mxu1 %v5826_v54 }
 0x3d5   : > { %v3799_v8 = vpack.c.bf16 %v3783_v6, %v3781_v5 }
 0x3d6   : > { %v3800_v2 = vpack.c.bf16 %v3784_v1, %v3782_v7 }
 0x3d7   : > { %4853 = vmatpush3.bf16.msra.mxu1 %v5826_v54 }
 0x3d8   : > { %4024 = vmatprep.mubr.bf16.mxu1 %v3800_v2 }
 0x3d9   : > { %4025 = vmatmul.mubr.bf16.gmra.mrb[60].mxu1 %v3799_v8 }
 0x474   : > { %v4774_v3 = vpop.f32.mrb[32].mxu1 }
 0x475   : > { %v4775_v15 = vpop.f32.mrb[33].mxu1 }
 0x476   : > { %v4776_v34 = vadd.f32 %v4775_v15, %v4774_v3  ;;  %v4777_v37 = vpop.f32.mrb[34].mxu1 }
 0x477   : > { %v4778_v13 = vpop.f32.mrb[35].mxu1 }
 0x478   : > { %v3971_v16 = vadd.f32 %v4776_v34, %v6586_v4  ;;  %v4779_v30 = vadd.f32 %v4778_v13, %v4777_v37 }
 0x47a   : > { %v3974_v32 = vadd.f32 %v4779_v30, %v6586_v4  ;;  %v4033_v9 = vmax.f32 %v3971_v16, 0.0 }
 0x47c   : > { %v4034_v11 = vmax.f32 %v3974_v32, 0.0  ;;  %v4780_v47 = vpop.f32.mrb[36].mxu1 }
 0x47d   : > { %v4781_v49 = vpop.f32.mrb[37].mxu1 }
 0x47e   : > { %v4782_v17 = vadd.f32 %v4781_v49, %v4780_v47  ;;  %v4783_v18 = vpop.f32.mrb[38].mxu1  ;;  %v4049_v19 = vpack.c.bf16 %v4034_v11, %v4033_v9 }
 0x47f   : > { %v4784_v20 = vpop.f32.mrb[39].mxu1 }
 0x480   : > { %v3979_v60 = vadd.f32 %v4782_v17, %v6586_v4  ;;  %v4785_v21 = vadd.f32 %v4784_v20, %v4783_v18  ;;  %4854 = vmatprep.mubr.bf16.mxu1 %v4049_v19 }
 0x482   : > { %v3982_v22 = vadd.f32 %v4785_v21, %v6586_v4  ;;  %v4035_v59 = vmax.f32 %v3979_v60, 0.0 }
 0x484   : > { %v4036_v63 = vmax.f32 %v3982_v22, 0.0  ;;  %v4786_v23 = vpop.f32.mrb[40].mxu1 }
 0x485   : > { %v4787_v24 = vpop.f32.mrb[41].mxu1 }
 0x486   : > { %v4050_v25 = vpack.c.bf16 %v4036_v63, %v4035_v59  ;;  %v4788_v26 = vadd.f32 %v4787_v24, %v4786_v23  ;;  %v4789_v27 = vpop.f32.mrb[42].mxu1 }
 0x487   : > { %v4790_v28 = vpop.f32.mrb[43].mxu1 }
 0x488   : > { %v3987_v29 = vadd.f32 %v4788_v26, %v6586_v4  ;;  %v4791_v31 = vadd.f32 %v4790_v28, %v4789_v27  ;;  %4855 = vmatmul.mubr.bf16.vlgmr.msra.gmra.mrb[64].mxu1 %v4050_v25  ;;  %v4743_v27 = vld [vmem:[%s6685_s8] ss:$0 sm:$0xff] }
 0x48a   : > { %v3990_v33 = vadd.f32 %v4791_v31, %v6586_v4  ;;  %v4037_v35 = vmax.f32 %v3987_v29, 0.0 }
 0x48c   : > { %v4038_v36 = vmax.f32 %v3990_v33, 0.0  ;;  %v4792_v38 = vpop.f32.mrb[44].mxu1 }
 0x48d   : > { %v4793_v39 = vpop.f32.mrb[45].mxu1 }
 0x48e   : > { %v4794_v40 = vadd.f32 %v4793_v39, %v4792_v38  ;;  %v4795_v41 = vpop.f32.mrb[46].mxu1  ;;  %v4051_v42 = vpack.c.bf16 %v4038_v36, %v4037_v35 }
 0x48f   : > { %v4796_v43 = vpop.f32.mrb[47].mxu1 }
 0x490   : > { %v3995_v44 = vadd.f32 %v4794_v40, %v6586_v4  ;;  %v4797_v45 = vadd.f32 %v4796_v43, %v4795_v41  ;;  %4858 = vmatprep.mubr.bf16.mxu1 %v4051_v42 }
 0x492   : > { %v3998_v46 = vadd.f32 %v4797_v45, %v6586_v4  ;;  %v4039_v48 = vmax.f32 %v3995_v44, 0.0 }
 0x494   : > { %v4040_v50 = vmax.f32 %v3998_v46, 0.0  ;;  %v4798_v52 = vpop.f32.mrb[48].mxu1 }
 0x495   : > { %v4799_v53 = vpop.f32.mrb[49].mxu1 }
 0x496   : > { %v4800_v55 = vadd.f32 %v4799_v53, %v4798_v52  ;;  %v4801_v56 = vpop.f32.mrb[50].mxu1  ;;  %v4052_v57 = vpack.c.bf16 %v4040_v50, %v4039_v48 }
 0x497   : > { %v4802_v58 = vpop.f32.mrb[51].mxu1 }
 0x498   : > { %v4003_v61 = vadd.f32 %v4800_v55, %v6586_v4  ;;  %v4803_v62 = vadd.f32 %v4802_v58, %v4801_v56  ;;  %4859 = vmatmul.mubr.bf16.gmra.mrb[68].mxu1 %v4052_v57 }
 0x49a   : > { %v4006_v0 = vadd.f32 %v4803_v62, %v6586_v4  ;;  %v4041_v5 = vmax.f32 %v4003_v61, 0.0 }
 0x49c   : > { %v4042_v6 = vmax.f32 %v4006_v0, 0.0  ;;  %v4804_v7 = vpop.f32.mrb[52].mxu1 }
 0x49d   : > { %v4805_v1 = vpop.f32.mrb[53].mxu1 }
 0x49e   : > { %v4806_v8 = vadd.f32 %v4805_v1, %v4804_v7  ;;  %v4807_v2 = vpop.f32.mrb[54].mxu1  ;;  %v4053_v10 = vpack.c.bf16 %v4042_v6, %v4041_v5 }
 0x49f   : > { %v4808_v12 = vpop.f32.mrb[55].mxu1 }
 0x4a0   : > { %v4011_v14 = vadd.f32 %v4806_v8, %v6586_v4  ;;  %v4809_v51 = vadd.f32 %v4808_v12, %v4807_v2  ;;  %4862 = vmatprep.mubr.bf16.mxu1 %v4053_v10 }
 0x4a2   : > { %v4014_v54 = vadd.f32 %v4809_v51, %v6586_v4  ;;  %v4043_v3 = vmax.f32 %v4011_v14, 0.0 }
 0x4a4   : > { %v4044_v15 = vmax.f32 %v4014_v54, 0.0  ;;  %v4810_v34 = vpop.f32.mrb[56].mxu1 }
 0x4a5   : > { %v4811_v37 = vpop.f32.mrb[57].mxu1 }
 0x4a6   : > { %v4812_v13 = vadd.f32 %v4811_v37, %v4810_v34  ;;  %v4813_v16 = vpop.f32.mrb[58].mxu1  ;;  %v4054_v30 = vpack.c.bf16 %v4044_v15, %v4043_v3 }
 0x4a7   : > { %v4814_v32 = vpop.f32.mrb[59].mxu1 }
 0x4a8   : > { %v4019_v9 = vadd.f32 %v4812_v13, %v6586_v4  ;;  %v4815_v11 = vadd.f32 %v4814_v32, %v4813_v16  ;;  %4863 = vmatmul.mubr.bf16.gmra.mrb[72].mxu1 %v4054_v30 }
 0x4aa   : > { %v4022_v47 = vadd.f32 %v4815_v11, %v6586_v4  ;;  %v4045_v49 = vmax.f32 %v4019_v9, 0.0 }
 0x4ac   : > { %v4046_v17 = vmax.f32 %v4022_v47, 0.0  ;;  %v4816_v18 = vpop.f32.mrb[60].mxu1 }
 0x4ad   : > { %v4817_v19 = vpop.f32.mrb[61].mxu1 }
 0x4ae   : > { %v4818_v20 = vadd.f32 %v4817_v19, %v4816_v18  ;;  %v4819_v60 = vpop.f32.mrb[62].mxu1  ;;  %v4055_v21 = vpack.c.bf16 %v4046_v17, %v4045_v49 }
 0x4af   : > { %v4820_v22 = vpop.f32.mrb[63].mxu1 }
 0x4b0   : > { %v4027_v59 = vadd.f32 %v4818_v20, %v6586_v4  ;;  %v4821_v63 = vadd.f32 %v4820_v22, %v4819_v60  ;;  %4866 = vmatprep.mubr.bf16.mxu1 %v4055_v21 }
 0x4b2   : > { %v4030_v23 = vadd.f32 %v4821_v63, %v6586_v4  ;;  %v4047_v24 = vmax.f32 %v4027_v59, 0.0 }
 0x4b4   : > { %v4048_v25 = vmax.f32 %v4030_v23, 0.0 }
 0x4b6   : > { %v4056_v26 = vpack.c.bf16 %v4048_v25, %v4047_v24 }
 0x4b8   : > { %4867 = vmatmul.mubr.bf16.gmra.mrb[76].mxu1 %v4056_v26 }
 0x55b   : > { %v4856_v28 = vpop.f32.mrb[64].mxu1 }
 0x55c   : > { %v4171_v29 = vadd.f32 %v4856_v28, %v4743_v27  ;;  %v4162_v31 = vpop.f32.mrb[65].mxu1 }
 0x55d   : > { %v4163_v33 = vadd.f32 %v4743_v27, %v4162_v31  ;;  %v4857_v35 = vpop.f32.mrb[66].mxu1 }
 0x55e   : > { %4227 = vst [vmem:[%s6608_s30 + $0x10] sm:$0xff] %v4171_v29  ;;  %v4174_v4 = vadd.f32 %v4857_v35, %v4743_v27  ;;  %v4165_v36 = vpop.f32.mrb[67].mxu1 }
 0x55f   : > { %4225 = vst [vmem:[%s6608_s30] sm:$0xff] %v4163_v33  ;;  %v4166_v38 = vadd.f32 %v4743_v27, %v4165_v36 }
 0x560   : > { %4228 = vst [vmem:[%s6608_s30 + $0x18] sm:$0xff] %v4174_v4 }
 0x561   : > { %4226 = vst [vmem:[%s6608_s30 + $0x8] sm:$0xff] %v4166_v38 }
 0x56b   : > { %v4860_v39 = vpop.f32.mrb[68].mxu1 }
 0x56c   : > { %v4187_v40 = vadd.f32 %v4860_v39, %v4743_v27  ;;  %v4178_v41 = vpop.f32.mrb[69].mxu1 }
 0x56d   : > { %v4179_v42 = vadd.f32 %v4743_v27, %v4178_v41  ;;  %v4861_v43 = vpop.f32.mrb[70].mxu1 }
 0x56e   : > { %4231 = vst [vmem:[%s6608_s30 + $0x30] sm:$0xff] %v4187_v40  ;;  %v4190_v44 = vadd.f32 %v4861_v43, %v4743_v27  ;;  %v4181_v45 = vpop.f32.mrb[71].mxu1 }
 0x56f   : > { %4229 = vst [vmem:[%s6608_s30 + $0x20] sm:$0xff] %v4179_v42  ;;  %v4182_v46 = vadd.f32 %v4743_v27, %v4181_v45 }
 0x570   : > { %4232 = vst [vmem:[%s6608_s30 + $0x38] sm:$0xff] %v4190_v44 }
 0x571   : > { %4230 = vst [vmem:[%s6608_s30 + $0x28] sm:$0xff] %v4182_v46 }
 0x57b   : > { %v4864_v48 = vpop.f32.mrb[72].mxu1 }
 0x57c   : > { %v4203_v50 = vadd.f32 %v4864_v48, %v4743_v27  ;;  %v4194_v52 = vpop.f32.mrb[73].mxu1 }
 0x57d   : > { %v4195_v53 = vadd.f32 %v4743_v27, %v4194_v52  ;;  %v4865_v55 = vpop.f32.mrb[74].mxu1 }
 0x57e   : > { %4235 = vst [vmem:[%s6608_s30 + $0x50] sm:$0xff] %v4203_v50  ;;  %v4206_v56 = vadd.f32 %v4865_v55, %v4743_v27  ;;  %v4197_v57 = vpop.f32.mrb[75].mxu1 }
 0x57f   : > { %4233 = vst [vmem:[%s6608_s30 + $0x40] sm:$0xff] %v4195_v53  ;;  %v4198_v58 = vadd.f32 %v4743_v27, %v4197_v57 }
 0x580   : > { %4236 = vst [vmem:[%s6608_s30 + $0x58] sm:$0xff] %v4206_v56 }
 0x581   : > { %4234 = vst [vmem:[%s6608_s30 + $0x48] sm:$0xff] %v4198_v58 }
 0x58b   : > { %v4868_v61 = vpop.f32.mrb[76].mxu1 }
 0x58c   : > { %v4219_v62 = vadd.f32 %v4868_v61, %v4743_v27  ;;  %v4210_v0 = vpop.f32.mrb[77].mxu1 }
 0x58d   : > { %v4211_v5 = vadd.f32 %v4743_v27, %v4210_v0  ;;  %v4869_v6 = vpop.f32.mrb[78].mxu1 }
 0x58e   : > { %4239 = vst [vmem:[%s6608_s30 + $0x70] sm:$0xff] %v4219_v62  ;;  %v4222_v7 = vadd.f32 %v4869_v6, %v4743_v27  ;;  %v4213_v1 = vpop.f32.mrb[79].mxu1 }
 0x58f   : > { %4237 = vst [vmem:[%s6608_s30 + $0x60] sm:$0xff] %v4211_v5  ;;  %v4214_v8 = vadd.f32 %v4743_v27, %v4213_v1 }
 0x590   : > { %4240 = vst [vmem:[%s6608_s30 + $0x78] sm:$0xff] %v4222_v7 }
 0x591   : > { %4238 = vst [vmem:[%s6608_s30 + $0x68] sm:$0xff] %v4214_v8 }
 0x592   : > { %5982 = shalt.err (!%p5979_p13)
}
 0x593   : > { %s5983_s16 = scalar_lea.hbm %s6628_s15, 2048  ;;  %s5987_s20 = scalar_lea.hbm %s6686_s9, 4096 }
 0x594   : > { %p5984_p9 = scmp.ne.s32.totalorder %s6628_s15, %s5983_s16  ;;  %p5988_p4 = scmp.lt.u32.totalorder %s6628_s15, %s6686_s9 }
 0x595   : > { %p5989_p8 = scmp.lt.u32.totalorder %s5987_s20, %s5983_s16  ;;  %p5991_p3 = scmp.lt.u32.totalorder %s5983_s16, %s6628_s15 }
 0x596   : > { %p5985_p0 = pnand %p5984_p9, %p6274_p10 }
 0x597   : > { %p5990_p6 = por %p5989_p8, %p5988_p4 }
 0x598   : > { %p5986_p11 = pneg %p5985_p0 }
 0x599   : > { %p5992_p5 = por %p5991_p3, %p5990_p6 }
 0x59b   : > { %p5993_p7 = pnand %p5992_p5, %p5986_p11 }
 0x59d   : > { %5996 = shalt.err (!%p5993_p7)
}
 0x59e   : > { %s6060_s22 = smov 128   ;;  %s6061_s29 = smov 8  }
 0x59f   : > { %5211 = dma.vmem_to_hbm [thread:$0]  (%p6274_p10), %s6630_s19, 2048, %s6628_s15, %s4242_s13, %s6060_s22, %s6060_s22, %s6061_s29  }
 0x5a0 PF: > { %s6714_s17 = sld [smem:[#allocation16_spill]]  ;;  %s6715_s18 = sld [smem:[#allocation17_spill]] }
 0x5a1   : > { %p6717_p2 = scmp.ge.s32.totalorder %s6043_s12, 2 }
 0x5a6   : > { %s4270_s25 = sand.u32 1, %s6714_s17   ;;  %p6716_p12 = scmp.ne.s32.totalorder %s6715_s18, 0 }
 0x5a7   : > { %s4271_s23 = scalar_lea.sflag [#allocation4], %s4270_s25 }
 0x5a8   : > { %p5231_p1 = pnand %p6717_p2, %p6716_p12 }
 0x5aa   : > { %6026 = dma.done.wait (!%p5231_p1), %s4271_s23, 2048  }
 0x5ab   : > { %6028 = vsyncadd (!%p5231_p1), %s4271_s23, 4294965248  ;;  %p24_p13 = scmp.ge.s32.totalorder %s6264_s28, 4   ;;  %s6718_s30 = smov %s6035_s10 }
 0x5ac   : > { %s6719_s10 = smov %s6039_s11  ;;  %s6720_s11 = smov %s6280_s26 }
 0x5ad   : > { %s6721_s12 = smov %s6264_s28  ;;  %26 = sbr.rel (!%p24_p13) target bundleno = 9 (0x9), region = 117 }
 0x5b4   :  { %4276 = vsyncpa [#allocation3], 1 }
 0x5b5   :  { %4278 = vsyncpa [#allocation3 + $0x1], 1 }
 0x5b6   :  { %4279 = vsyncpa [#allocation6], 1 }
 0x5b7   :  { %4280 = vsyncpa [#allocation9], 1 }
 0x5b8   :  { %4281 = vsyncpa [#allocation4], 1 }
 0x5b9   :  { %4283 = vsyncpa [#allocation4 + $0x1], 1 }

</bundles_post_ra>
